<compile_context>
chip_gen: v6e
topology: v6e:2x2x1
jax: 0.10.0
libtpu: 0.0.40
codegen_flags: <defaults>
</compile_context>

<pallas_src>
import functools

import jax
import jax.numpy as jnp
from jax import lax
from jax.experimental import pallas as pl
from jax.experimental.pallas import tpu as pltpu


def autopad(k, p=None):
    if p is None:
        p = k // 2 if isinstance(k, int) else [x // 2 for x in k]
    return p


def _conv_bn_relu6_kernel(x_ref, w_ref, b_ref, o_ref, *, k, s, Ho, Wo, th, n_chunks):
    # x_ref : (s*s, Hp2, Wp2, C1)  space-to-depth padded input (one image, full C1)
    # w_ref : (k*k, C1, TC2)       BN-scale-folded weights, tap-major
    # b_ref : (1, TC2)             fused BN bias (f32)
    # o_ref : (1, Ho, Wo, TC2)     output tile
    c1 = x_ref.shape[-1]
    tc2 = o_ref.shape[-1]
    bias = b_ref[...].astype(jnp.float32)                  # (1, TC2)
    m = th * Wo                                             # live f32 accumulator rows

    def chunk(c, carry):
        # Uniform chunk size; ragged tail handled by clamping the start (overlapping rows
        # are simply recomputed and rewritten with identical values).
        r0 = jnp.minimum(c * th, Ho - th)
        acc = jnp.zeros((m, tc2), jnp.float32)
        # k is a static python int -> fully unrolled tap loop; each tap is one MXU matmul
        # on a dense, unit-stride patch (stride folded into the space-to-depth phase axis).
        for kh in range(k):
            for kw in range(k):
                ph = (kh % s) * s + (kw % s)                # space-to-depth phase of this tap
                patch = x_ref[ph, pl.ds(r0 + kh // s, th), pl.ds(kw // s, Wo), :]
                acc = acc + jnp.dot(patch.reshape(m, c1), w_ref[kh * k + kw],
                                    preferred_element_type=jnp.float32)
        y = jnp.clip(acc + bias, 0.0, 6.0)                  # fused BN bias + ReLU6
        o_ref[0, pl.ds(r0, th), :, :] = y.reshape(th, Wo, tc2).astype(o_ref.dtype)
        return carry

    if n_chunks == 1:
        chunk(0, 0)
    else:
        lax.fori_loop(0, n_chunks, chunk, 0)


def conv_forward_nhwc(x_nhwc, weight_oihw, bn_gamma, bn_beta, bn_mean, bn_var, *,
                      k=1, s=1, p=None, eps=1e-5,
                      compute_dtype=jnp.bfloat16, tc2=None, row_block=None):
    """ReLU6(BN(conv2d(x, W))) on NHWC activations (enable_bias=False, groups=1)."""
    p = autopad(k, p)
    N, H, W, C1 = x_nhwc.shape
    C2 = weight_oihw.shape[0]
    assert weight_oihw.shape == (C2, C1, k, k)

    Ho = (H + 2 * p - k) // s + 1
    Wo = (W + 2 * p - k) // s + 1

    # --- Space-to-depth padding: every kernel tap becomes a dense unit-stride slice. ---
    off = (k - 1) // s
    Hp2, Wp2 = Ho + off, Wo + off
    pad_b, pad_r = Hp2 * s - H - p, Wp2 * s - W - p
    assert pad_b >= 0 and pad_r >= 0, "unsupported padding configuration"
    x_pad = jnp.pad(x_nhwc, ((0, 0), (p, pad_b), (p, pad_r), (0, 0))).astype(compute_dtype)
    # x_s2d[(n*s + ph)*s + pw, h2, w2, c] = x_pad[n, h2*s + ph, w2*s + pw, c]
    x_s2d = (x_pad.reshape(N, Hp2, s, Wp2, s, C1)
                  .transpose(0, 2, 4, 1, 3, 5)
                  .reshape(N * s * s, Hp2, Wp2, C1))

    # --- Fold the BN scale into the conv weights (f32 math, single cast); f32 fused bias. ---
    scale = bn_gamma / jnp.sqrt(bn_var + eps)                               # (C2,)
    bias = (bn_beta - bn_mean * scale).reshape(1, C2).astype(jnp.float32)
    w = jnp.transpose(weight_oihw, (2, 3, 1, 0)).reshape(k * k, C1, C2)     # tap-major
    w = (w * scale).astype(compute_dtype)

    # C2 tiling: 128-wide output tiles keep stores lane-dense on all generations.
    if tc2 is None:
        tc2 = 128 if C2 % 128 == 0 else C2
    assert C2 % tc2 == 0
    n_c2 = C2 // tc2

    # Row chunking: keep the live f32 accumulator (th*Wo, TC2) at ~<=96 KiB (vreg-file bound).
    m_target = max(1, (96 * 1024) // (4 * tc2))
    th = row_block or max(1, min(Ho, max(1, m_target // max(Wo, 1))))
    th = min(th, Ho)
    n_chunks = pl.cdiv(Ho, th)

    kernel = functools.partial(_conv_bn_relu6_kernel, k=k, s=s, Ho=Ho, Wo=Wo,
                               th=th, n_chunks=n_chunks)

    # Explicit VMEM budget (double-buffered blocks + slack), capped at v7x's 64 MiB.
    bpe_in = jnp.dtype(compute_dtype).itemsize
    bpe_out = jnp.dtype(x_nhwc.dtype).itemsize
    x_blk = s * s * Hp2 * Wp2 * C1 * bpe_in
    w_blk = k * k * C1 * tc2 * bpe_in
    o_blk = Ho * Wo * tc2 * bpe_out
    need = 2 * (x_blk + w_blk + o_blk) + (2 << 20)
    vmem_limit = int(min(max(need, 32 << 20), 64 << 20))

    flops = 2 * N * Ho * Wo * C1 * C2 * k * k
    bytes_accessed = int(x_s2d.size * bpe_in + N * w.size * bpe_in
                         + N * Ho * Wo * C2 * bpe_out)

    out = pl.pallas_call(
        kernel,
        out_shape=jax.ShapeDtypeStruct((N, Ho, Wo, C2), x_nhwc.dtype),
        grid=(N, n_c2),
        in_specs=[
            # Image block index depends only on n -> fetched once per image, never re-DMA'd
            # while the C2-block axis cycles underneath it.
            pl.BlockSpec((s * s, Hp2, Wp2, C1), lambda n, j: (n, 0, 0, 0)),
            pl.BlockSpec((k * k, C1, tc2), lambda n, j: (0, 0, j)),
            pl.BlockSpec((1, tc2), lambda n, j: (0, j)),
        ],
        out_specs=pl.BlockSpec((1, Ho, Wo, tc2), lambda n, j: (n, 0, 0, j)),
        compiler_params=pltpu.CompilerParams(
            dimension_semantics=("parallel", "parallel"),
            vmem_limit_bytes=vmem_limit),
        cost_estimate=pl.CostEstimate(flops=flops, transcendentals=0,
                                      bytes_accessed=bytes_accessed),
    )(x_s2d, w, bias)
    return out


def conv_forward(x_nchw, weight_oihw, bn_gamma, bn_beta, bn_mean, bn_var, *,
                 k=1, s=1, p=None, eps=1e-5,
                 compute_dtype=jnp.bfloat16, tc2=None, row_block=None):
    """Conv.forward equivalent on NCHW tensors (PyTorch module interface)."""
    x = jnp.transpose(x_nchw, (0, 2, 3, 1))                 # NCHW -> NHWC
    y = conv_forward_nhwc(x, weight_oihw, bn_gamma, bn_beta, bn_mean, bn_var,
                          k=k, s=s, p=p, eps=eps, compute_dtype=compute_dtype,
                          tc2=tc2, row_block=row_block)
    return jnp.transpose(y, (0, 3, 1, 2))                   # NHWC -> NCHW


def _reference(x_nchw, weight_oihw, g, b, m, v, *, k, s, p, eps=1e-5):
    y = lax.conv_general_dilated(
        x_nchw, weight_oihw, window_strides=(s, s), padding=[(p, p), (p, p)],
        dimension_numbers=("NCHW", "OIHW", "NCHW"),
        precision=lax.Precision.HIGHEST)
    scale = (g / jnp.sqrt(v + eps)).reshape(1, -1, 1, 1)
    bias = (b - m * g / jnp.sqrt(v + eps)).reshape(1, -1, 1, 1)
    return jnp.clip(y * scale + bias, 0.0, 6.0)


if __name__ == "__main__":
    def make_inputs(key, N, C1, C2, H, W, K):
        kx, kw, kg, kb, km, kv = jax.random.split(key, 6)
        x = jax.random.normal(kx, (N, C1, H, W), dtype=jnp.float32)
        w = 0.1 * jax.random.normal(kw, (C2, C1, K, K), dtype=jnp.float32)
        g = 1.0 + 0.1 * jax.random.normal(kg, (C2,), dtype=jnp.float32)
        b = 0.1 * jax.random.normal(kb, (C2,), dtype=jnp.float32)
        m = 0.05 * jax.random.normal(km, (C2,), dtype=jnp.float32)
        v = jnp.abs(jax.random.normal(kv, (C2,), dtype=jnp.float32)) + 0.5
        return x, w, g, b, m, v

    key = jax.random.PRNGKey(0)
    k1, k2 = jax.random.split(key)

    # Case 1: Conv(c1=4, c2=8, k=3, s=1) on 16x16 (first-layer-like, autopad(3) = 1).
    N, C1, C2, H, W, K, S = 2, 4, 8, 16, 16, 3, 1
    P = autopad(K)
    x, w, g, b, m, v = make_inputs(k1, N, C1, C2, H, W, K)
    ref = _reference(x, w, g, b, m, v, k=K, s=S, p=P)

    out = conv_forward(x, w, g, b, m, v, k=K, s=S, p=P, compute_dtype=jnp.float32)
    out = jax.block_until_ready(out)
    assert out.shape == (N, C2, H, W)
    assert jnp.allclose(out, ref, rtol=3e-2, atol=3e-2), "f32 path mismatch vs. XLA reference"

    # bf16 MXU-input path on the same case.
    out_bf16 = conv_forward(x, w, g, b, m, v, k=K, s=S, p=P, compute_dtype=jnp.bfloat16)
    out_bf16 = jax.block_until_ready(out_bf16)
    assert jnp.allclose(out_bf16, ref, rtol=8e-2, atol=8e-2), "bf16 path mismatch"

    # Case 2: 32->256 channels, k=3, s=2 on 8x8 — exercises the C2 grid axis (TC2=128, n_c2=2)
    # and the stride-2 space-to-depth path (all kernel loads stay dense / unit-stride).
    N2, C1b, C2b, H2, W2, K2, S2 = 2, 32, 256, 8, 8, 3, 2
    P2 = autopad(K2)
    x2, w2, g2, b2, m2, v2 = make_inputs(k2, N2, C1b, C2b, H2, W2, K2)
    ref2 = _reference(x2, w2, g2, b2, m2, v2, k=K2, s=S2, p=P2)
    out2 = conv_forward(x2, w2, g2, b2, m2, v2, k=K2, s=S2, p=P2, compute_dtype=jnp.float32)
    out2 = jax.block_until_ready(out2)
    assert out2.shape == ref2.shape
    assert jnp.allclose(out2, ref2, rtol=3e-2, atol=3e-2), "strided (s=2) path mismatch"

    print("KERNEL_OK")
</pallas_src>

<mosaic_0001>
module attributes {stable_mosaic.version = 11 : i64} {
  func.func @_conv_bn_relu6_kernel(%arg0: i32, %arg1: i32, %arg2: memref<1x18x18x4xf32, #tpu.memory_space<vmem>>, %arg3: memref<9x4x8xf32, #tpu.memory_space<vmem>>, %arg4: memref<1x8xf32, #tpu.memory_space<vmem>>, %arg5: memref<1x16x16x8xf32, #tpu.memory_space<vmem>>) attributes {dimension_semantics = [#tpu.dimension_semantics<parallel>, #tpu.dimension_semantics<parallel>], iteration_bounds = array<i64: 2, 1>, scalar_prefetch = 0 : i64, scratch_operands = 0 : i64, tpu.core_type = #tpu.core_type<tc>, window_params = [{transform_indices = @transform_0, window_bounds = array<i64: 1, 18, 18, 4>}, {transform_indices = @transform_1, window_bounds = array<i64: 9, 4, 8>}, {transform_indices = @transform_2, window_bounds = array<i64: 1, 8>}, {transform_indices = @transform_3, window_bounds = array<i64: 1, 16, 16, 8>}]} {
    %c0 = arith.constant 0 : index
    %c0_0 = arith.constant 0 : index
    %0 = vector.load %arg4[%c0, %c0_0] : memref<1x8xf32, #tpu.memory_space<vmem>>, vector<1x8xf32>
    %c0_i32 = arith.constant 0 : i32
    %c0_i32_1 = arith.constant 0 : i32
    %1 = arith.minsi %c0_i32, %c0_i32_1 : i32
    %cst = arith.constant 0.000000e+00 : f32
    %2 = vector.broadcast %cst : f32 to vector<256x8xf32>
    %c0_i32_2 = arith.constant 0 : i32
    %3 = arith.addi %1, %c0_i32_2 : i32
    %c0_3 = arith.constant 0 : index
    %4 = arith.index_cast %3 : i32 to index
    %c0_4 = arith.constant 0 : index
    %c0_5 = arith.constant 0 : index
    %5 = vector.load %arg2[%c0_3, %4, %c0_4, %c0_5] : memref<1x18x18x4xf32, #tpu.memory_space<vmem>>, vector<1x16x16x4xf32>
    %6 = vector.shape_cast %5 : vector<1x16x16x4xf32> to vector<16x16x4xf32>
    %7 = vector.shape_cast %6 : vector<16x16x4xf32> to vector<256x4xf32>
    %c0_6 = arith.constant 0 : index
    %c0_7 = arith.constant 0 : index
    %c0_8 = arith.constant 0 : index
    %8 = vector.load %arg3[%c0_6, %c0_7, %c0_8] : memref<9x4x8xf32, #tpu.memory_space<vmem>>, vector<1x4x8xf32>
    %9 = vector.shape_cast %8 : vector<1x4x8xf32> to vector<4x8xf32>
    %cst_9 = arith.constant dense<0.000000e+00> : vector<256x8xf32>
    %10 = tpu.matmul %7, %9, %cst_9 {dimension_numbers = #tpu.dot_dimension_numbers<[1], [0], [0], [1], [0, 0, 1, 1], [], []>} : vector<256x4xf32>, vector<4x8xf32>, vector<256x8xf32> -> vector<256x8xf32>
    %11 = arith.addf %2, %10 : vector<256x8xf32>
    %c0_i32_10 = arith.constant 0 : i32
    %12 = arith.addi %1, %c0_i32_10 : i32
    %c0_11 = arith.constant 0 : index
    %13 = arith.index_cast %12 : i32 to index
    %c1 = arith.constant 1 : index
    %c0_12 = arith.constant 0 : index
    %14 = vector.load %arg2[%c0_11, %13, %c1, %c0_12] : memref<1x18x18x4xf32, #tpu.memory_space<vmem>>, vector<1x16x16x4xf32>
    %15 = vector.shape_cast %14 : vector<1x16x16x4xf32> to vector<16x16x4xf32>
    %16 = vector.shape_cast %15 : vector<16x16x4xf32> to vector<256x4xf32>
    %c1_13 = arith.constant 1 : index
    %c0_14 = arith.constant 0 : index
    %c0_15 = arith.constant 0 : index
    %17 = vector.load %arg3[%c1_13, %c0_14, %c0_15] : memref<9x4x8xf32, #tpu.memory_space<vmem>>, vector<1x4x8xf32>
    %18 = vector.shape_cast %17 : vector<1x4x8xf32> to vector<4x8xf32>
    %cst_16 = arith.constant dense<0.000000e+00> : vector<256x8xf32>
    %19 = tpu.matmul %16, %18, %cst_16 {dimension_numbers = #tpu.dot_dimension_numbers<[1], [0], [0], [1], [0, 0, 1, 1], [], []>} : vector<256x4xf32>, vector<4x8xf32>, vector<256x8xf32> -> vector<256x8xf32>
    %20 = arith.addf %11, %19 : vector<256x8xf32>
    %c0_i32_17 = arith.constant 0 : i32
    %21 = arith.addi %1, %c0_i32_17 : i32
    %c0_18 = arith.constant 0 : index
    %22 = arith.index_cast %21 : i32 to index
    %c2 = arith.constant 2 : index
    %c0_19 = arith.constant 0 : index
    %23 = vector.load %arg2[%c0_18, %22, %c2, %c0_19] : memref<1x18x18x4xf32, #tpu.memory_space<vmem>>, vector<1x16x16x4xf32>
    %24 = vector.shape_cast %23 : vector<1x16x16x4xf32> to vector<16x16x4xf32>
    %25 = vector.shape_cast %24 : vector<16x16x4xf32> to vector<256x4xf32>
    %c2_20 = arith.constant 2 : index
    %c0_21 = arith.constant 0 : index
    %c0_22 = arith.constant 0 : index
    %26 = vector.load %arg3[%c2_20, %c0_21, %c0_22] : memref<9x4x8xf32, #tpu.memory_space<vmem>>, vector<1x4x8xf32>
    %27 = vector.shape_cast %26 : vector<1x4x8xf32> to vector<4x8xf32>
    %cst_23 = arith.constant dense<0.000000e+00> : vector<256x8xf32>
    %28 = tpu.matmul %25, %27, %cst_23 {dimension_numbers = #tpu.dot_dimension_numbers<[1], [0], [0], [1], [0, 0, 1, 1], [], []>} : vector<256x4xf32>, vector<4x8xf32>, vector<256x8xf32> -> vector<256x8xf32>
    %29 = arith.addf %20, %28 : vector<256x8xf32>
    %c1_i32 = arith.constant 1 : i32
    %30 = arith.addi %1, %c1_i32 : i32
    %c0_24 = arith.constant 0 : index
    %31 = arith.index_cast %30 : i32 to index
    %c0_25 = arith.constant 0 : index
    %c0_26 = arith.constant 0 : index
    %32 = vector.load %arg2[%c0_24, %31, %c0_25, %c0_26] : memref<1x18x18x4xf32, #tpu.memory_space<vmem>>, vector<1x16x16x4xf32>
    %33 = vector.shape_cast %32 : vector<1x16x16x4xf32> to vector<16x16x4xf32>
    %34 = vector.shape_cast %33 : vector<16x16x4xf32> to vector<256x4xf32>
    %c3 = arith.constant 3 : index
    %c0_27 = arith.constant 0 : index
    %c0_28 = arith.constant 0 : index
    %35 = vector.load %arg3[%c3, %c0_27, %c0_28] : memref<9x4x8xf32, #tpu.memory_space<vmem>>, vector<1x4x8xf32>
    %36 = vector.shape_cast %35 : vector<1x4x8xf32> to vector<4x8xf32>
    %cst_29 = arith.constant dense<0.000000e+00> : vector<256x8xf32>
    %37 = tpu.matmul %34, %36, %cst_29 {dimension_numbers = #tpu.dot_dimension_numbers<[1], [0], [0], [1], [0, 0, 1, 1], [], []>} : vector<256x4xf32>, vector<4x8xf32>, vector<256x8xf32> -> vector<256x8xf32>
    %38 = arith.addf %29, %37 : vector<256x8xf32>
    %c1_i32_30 = arith.constant 1 : i32
    %39 = arith.addi %1, %c1_i32_30 : i32
    %c0_31 = arith.constant 0 : index
    %40 = arith.index_cast %39 : i32 to index
    %c1_32 = arith.constant 1 : index
    %c0_33 = arith.constant 0 : index
    %41 = vector.load %arg2[%c0_31, %40, %c1_32, %c0_33] : memref<1x18x18x4xf32, #tpu.memory_space<vmem>>, vector<1x16x16x4xf32>
    %42 = vector.shape_cast %41 : vector<1x16x16x4xf32> to vector<16x16x4xf32>
    %43 = vector.shape_cast %42 : vector<16x16x4xf32> to vector<256x4xf32>
    %c4 = arith.constant 4 : index
    %c0_34 = arith.constant 0 : index
    %c0_35 = arith.constant 0 : index
    %44 = vector.load %arg3[%c4, %c0_34, %c0_35] : memref<9x4x8xf32, #tpu.memory_space<vmem>>, vector<1x4x8xf32>
    %45 = vector.shape_cast %44 : vector<1x4x8xf32> to vector<4x8xf32>
    %cst_36 = arith.constant dense<0.000000e+00> : vector<256x8xf32>
    %46 = tpu.matmul %43, %45, %cst_36 {dimension_numbers = #tpu.dot_dimension_numbers<[1], [0], [0], [1], [0, 0, 1, 1], [], []>} : vector<256x4xf32>, vector<4x8xf32>, vector<256x8xf32> -> vector<256x8xf32>
    %47 = arith.addf %38, %46 : vector<256x8xf32>
    %c1_i32_37 = arith.constant 1 : i32
    %48 = arith.addi %1, %c1_i32_37 : i32
    %c0_38 = arith.constant 0 : index
    %49 = arith.index_cast %48 : i32 to index
    %c2_39 = arith.constant 2 : index
    %c0_40 = arith.constant 0 : index
    %50 = vector.load %arg2[%c0_38, %49, %c2_39, %c0_40] : memref<1x18x18x4xf32, #tpu.memory_space<vmem>>, vector<1x16x16x4xf32>
    %51 = vector.shape_cast %50 : vector<1x16x16x4xf32> to vector<16x16x4xf32>
    %52 = vector.shape_cast %51 : vector<16x16x4xf32> to vector<256x4xf32>
    %c5 = arith.constant 5 : index
    %c0_41 = arith.constant 0 : index
    %c0_42 = arith.constant 0 : index
    %53 = vector.load %arg3[%c5, %c0_41, %c0_42] : memref<9x4x8xf32, #tpu.memory_space<vmem>>, vector<1x4x8xf32>
    %54 = vector.shape_cast %53 : vector<1x4x8xf32> to vector<4x8xf32>
    %cst_43 = arith.constant dense<0.000000e+00> : vector<256x8xf32>
    %55 = tpu.matmul %52, %54, %cst_43 {dimension_numbers = #tpu.dot_dimension_numbers<[1], [0], [0], [1], [0, 0, 1, 1], [], []>} : vector<256x4xf32>, vector<4x8xf32>, vector<256x8xf32> -> vector<256x8xf32>
    %56 = arith.addf %47, %55 : vector<256x8xf32>
    %c2_i32 = arith.constant 2 : i32
    %57 = arith.addi %1, %c2_i32 : i32
    %c0_44 = arith.constant 0 : index
    %58 = arith.index_cast %57 : i32 to index
    %c0_45 = arith.constant 0 : index
    %c0_46 = arith.constant 0 : index
    %59 = vector.load %arg2[%c0_44, %58, %c0_45, %c0_46] : memref<1x18x18x4xf32, #tpu.memory_space<vmem>>, vector<1x16x16x4xf32>
    %60 = vector.shape_cast %59 : vector<1x16x16x4xf32> to vector<16x16x4xf32>
    %61 = vector.shape_cast %60 : vector<16x16x4xf32> to vector<256x4xf32>
    %c6 = arith.constant 6 : index
    %c0_47 = arith.constant 0 : index
    %c0_48 = arith.constant 0 : index
    %62 = vector.load %arg3[%c6, %c0_47, %c0_48] : memref<9x4x8xf32, #tpu.memory_space<vmem>>, vector<1x4x8xf32>
    %63 = vector.shape_cast %62 : vector<1x4x8xf32> to vector<4x8xf32>
    %cst_49 = arith.constant dense<0.000000e+00> : vector<256x8xf32>
    %64 = tpu.matmul %61, %63, %cst_49 {dimension_numbers = #tpu.dot_dimension_numbers<[1], [0], [0], [1], [0, 0, 1, 1], [], []>} : vector<256x4xf32>, vector<4x8xf32>, vector<256x8xf32> -> vector<256x8xf32>
    %65 = arith.addf %56, %64 : vector<256x8xf32>
    %c2_i32_50 = arith.constant 2 : i32
    %66 = arith.addi %1, %c2_i32_50 : i32
    %c0_51 = arith.constant 0 : index
    %67 = arith.index_cast %66 : i32 to index
    %c1_52 = arith.constant 1 : index
    %c0_53 = arith.constant 0 : index
    %68 = vector.load %arg2[%c0_51, %67, %c1_52, %c0_53] : memref<1x18x18x4xf32, #tpu.memory_space<vmem>>, vector<1x16x16x4xf32>
    %69 = vector.shape_cast %68 : vector<1x16x16x4xf32> to vector<16x16x4xf32>
    %70 = vector.shape_cast %69 : vector<16x16x4xf32> to vector<256x4xf32>
    %c7 = arith.constant 7 : index
    %c0_54 = arith.constant 0 : index
    %c0_55 = arith.constant 0 : index
    %71 = vector.load %arg3[%c7, %c0_54, %c0_55] : memref<9x4x8xf32, #tpu.memory_space<vmem>>, vector<1x4x8xf32>
    %72 = vector.shape_cast %71 : vector<1x4x8xf32> to vector<4x8xf32>
    %cst_56 = arith.constant dense<0.000000e+00> : vector<256x8xf32>
    %73 = tpu.matmul %70, %72, %cst_56 {dimension_numbers = #tpu.dot_dimension_numbers<[1], [0], [0], [1], [0, 0, 1, 1], [], []>} : vector<256x4xf32>, vector<4x8xf32>, vector<256x8xf32> -> vector<256x8xf32>
    %74 = arith.addf %65, %73 : vector<256x8xf32>
    %c2_i32_57 = arith.constant 2 : i32
    %75 = arith.addi %1, %c2_i32_57 : i32
    %c0_58 = arith.constant 0 : index
    %76 = arith.index_cast %75 : i32 to index
    %c2_59 = arith.constant 2 : index
    %c0_60 = arith.constant 0 : index
    %77 = vector.load %arg2[%c0_58, %76, %c2_59, %c0_60] : memref<1x18x18x4xf32, #tpu.memory_space<vmem>>, vector<1x16x16x4xf32>
    %78 = vector.shape_cast %77 : vector<1x16x16x4xf32> to vector<16x16x4xf32>
    %79 = vector.shape_cast %78 : vector<16x16x4xf32> to vector<256x4xf32>
    %c8 = arith.constant 8 : index
    %c0_61 = arith.constant 0 : index
    %c0_62 = arith.constant 0 : index
    %80 = vector.load %arg3[%c8, %c0_61, %c0_62] : memref<9x4x8xf32, #tpu.memory_space<vmem>>, vector<1x4x8xf32>
    %81 = vector.shape_cast %80 : vector<1x4x8xf32> to vector<4x8xf32>
    %cst_63 = arith.constant dense<0.000000e+00> : vector<256x8xf32>
    %82 = tpu.matmul %79, %81, %cst_63 {dimension_numbers = #tpu.dot_dimension_numbers<[1], [0], [0], [1], [0, 0, 1, 1], [], []>} : vector<256x4xf32>, vector<4x8xf32>, vector<256x8xf32> -> vector<256x8xf32>
    %83 = arith.addf %74, %82 : vector<256x8xf32>
    %84 = vector.broadcast %0 : vector<1x8xf32> to vector<256x8xf32>
    %85 = arith.addf %83, %84 : vector<256x8xf32>
    %cst_64 = arith.constant 0.000000e+00 : f32
    %cst_65 = arith.constant 6.000000e+00 : f32
    %86 = vector.broadcast %cst_64 : f32 to vector<256x8xf32>
    %87 = arith.maximumf %86, %85 : vector<256x8xf32>
    %88 = vector.broadcast %cst_65 : f32 to vector<256x8xf32>
    %89 = arith.minimumf %88, %87 : vector<256x8xf32>
    %90 = vector.shape_cast %89 : vector<256x8xf32> to vector<16x16x8xf32>
    %c0_66 = arith.constant 0 : index
    %91 = arith.index_cast %1 : i32 to index
    %c0_67 = arith.constant 0 : index
    %c0_68 = arith.constant 0 : index
    %92 = vector.load %arg5[%c0_66, %91, %c0_67, %c0_68] : memref<1x16x16x8xf32, #tpu.memory_space<vmem>>, vector<1x16x16x8xf32>
    %93 = vector.shape_cast %92 : vector<1x16x16x8xf32> to vector<16x16x8xf32>
    %94 = vector.shape_cast %90 : vector<16x16x8xf32> to vector<1x16x16x8xf32>
    tpu.vector_store %arg5[%c0_66, %91, %c0_67, %c0_68], %94 {strides = array<i32>} : memref<1x16x16x8xf32, #tpu.memory_space<vmem>>, vector<1x16x16x8xf32>,
    return
  }
  func.func @transform_0(%arg0: i32, %arg1: i32) -> (i32, i32, i32, i32) {
    %c0_i32 = arith.constant 0 : i32
    %c0_i32_0 = arith.constant 0 : i32
    %c0_i32_1 = arith.constant 0 : i32
    %c0_i32_2 = arith.constant 0 : i32
    return %arg0, %c0_i32, %c0_i32_0, %c0_i32_1 : i32, i32, i32, i32
  }
  func.func @transform_1(%arg0: i32, %arg1: i32) -> (i32, i32, i32) {
    %c0_i32 = arith.constant 0 : i32
    %c0_i32_0 = arith.constant 0 : i32
    %c0_i32_1 = arith.constant 0 : i32
    return %c0_i32, %c0_i32_0, %arg1 : i32, i32, i32
  }
  func.func @transform_2(%arg0: i32, %arg1: i32) -> (i32, i32) {
    %c0_i32 = arith.constant 0 : i32
    %c0_i32_0 = arith.constant 0 : i32
    return %c0_i32, %arg1 : i32, i32
  }
  func.func @transform_3(%arg0: i32, %arg1: i32) -> (i32, i32, i32, i32) {
    %c0_i32 = arith.constant 0 : i32
    %c0_i32_0 = arith.constant 0 : i32
    %c0_i32_1 = arith.constant 0 : i32
    return %arg0, %c0_i32, %c0_i32_0, %arg1 : i32, i32, i32, i32
  }
}

</mosaic_0001>

<bundles_post_ra>
// kernel: tpu_custom_call.1
= control target key start
LH: loop header
LB: loop body
LE: loop exit
PB: predicated region body
PF: predicated region fallthrough
CT: control target
= control target key end

     0   :  { %s5241_s12 = smov 0   ;;  %s5243_s13 = smov 0   ;;  %s6792_s0 = inlined_call_operand.vmem [shape: f32[2,18,18,4], index: 0, kind: input, shape index: {}]   ;;  %s6793_s1 = inlined_call_operand.vmem [shape: f32[9,4,8], index: 1, kind: input, shape index: {}]   ;;  %s6794_s2 = inlined_call_operand.vmem [shape: f32[1,8], index: 2, kind: input, shape index: {}]   ;;  %s6795_s3 = inlined_call_operand.vmem [shape: f32[2,16,16,8], index: 3, kind: output, shape index: {}]  }
   0x1   :  { %s5245_s14 = smov 0  }
   0x2 LB: > { %s25_s15 = sadd.s32 1, %s5215_s13  ;;  %p3918_p0 = scmp.ge.s32.totalorder %s5219_s14, 1  ;;  %s5219_s14 = sphi %s5245_s14, %s13_s14   ;;  %s5215_s13 = sphi %s5243_s13, %s7025_s13   ;;  %s5211_s12 = sphi %s5241_s12, %s7024_s12  }
   0x3   : > { %p27_p1 = scmp.ge.s32.totalorder %s25_s15, 2  ;;  %p168_p2 = scmp.lt.s32.totalorder %s5219_s14, 3 }
   0x5   : > { %s7027_s15 = smov (%p27_p1, %s25_s15), 0  ;;  %p169_p3 = pnand %p3918_p0, %p168_p2 }
   0x7   : > { %172 = sbr.rel (%p169_p3) target bundleno = 511 (0x1ff), region = 32 }
   0xc   : > { %v3922_v0 = vld [vmem:[%s6793_s1 + $0x4] sm:$0xf]  ;;  %vm387_vm0 = vcmask 1043456   ;;  %p202_p4 = scmp.lt.s32.totalorder %s5211_s12, 1  ;;  %v255_v1 = vld [vmem:[%s6793_s1] sm:$0xf] }
   0xd   : > { %5170 = vmatprep.subr.msk.mxu1 %vm387_vm0, %v3922_v0  ;;  %4720 = vmatprep.subr.msk.mxu0 %vm387_vm0, %v3922_v0  ;;  %v3989_v2 = vld [vmem:[%s6793_s1 + $0x8] sm:$0xf]  ;;  %vm290_vm1 = vcmask 31744   ;;  %v5305_v9 = vld [vmem:[%s6793_s1 + $0xc] sm:$0xf]  ;;  %vm3774_vm2 = vcmask 64512  }
   0xe   : > { %5171 = vmatpush3.msk.msra.mxu1 %vm387_vm0, %v3922_v0  ;;  %4721 = vmatpush3.msk.msra.mxu0 %vm387_vm0, %v3922_v0  ;;  %s7029_s12 = smov (!%p202_p4, %s5211_s12), 1  ;;  %v5310_v10 = vld [vmem:[%s6793_s1 + $0x10] sm:$0xf]  ;;  %v5469_v43 = vld [vmem:[%s6793_s1 + $0x14] sm:$0xf] }
   0xf   : > { %4770 = vmatprep.subr.msk.mxu1 %vm387_vm0, %v255_v1  ;;  %4820 = vmatprep.subr.msk.mxu0 %vm387_vm0, %v3989_v2  ;;  %s5172_s22 = smul.u32 432, %s7029_s12  ;;  %v5474_v44 = vld [vmem:[%s6793_s1 + $0x18] sm:$0xf]  ;;  %s4422_s17 = sshll.u32 %s7029_s12, 8 }
  0x10   : > { %s6613_s19 = scalar_lea.vmem %s6795_s3, %s4422_s17 }
  0x11   : > { %s5280_s25 = scalar_lea.vmem %s6792_s0, %s5172_s22 }
  0x12   : > { %v256_v3 = vld [vmem:[%s5280_s25 + $0x1] sm:$0xff]  ;;  %v257_v5 = vld [vmem:[%s5280_s25 + $0x9] sm:$0xff]  ;;  %v5294_v7 = vld [vmem:[%s5280_s25 + $0x19] sm:$0xff] }
  0x13   : > { %v5284_v4 = vld [vmem:[%s5280_s25 + $0xc1] sm:$0xff]  ;;  %4722 = vmatprep.mubr.msk.f32.mxu0 %vm290_vm1, %v256_v3  ;;  %v5291_v6 = vld [vmem:[%s5280_s25 + $0xc9] sm:$0xff]  ;;  %v5297_v8 = vld [vmem:[%s5280_s25 + $0xd9] sm:$0xff] }
  0x14   : > { %4746 = vmatprep.mubr.msk.f32.mxu1 %vm290_vm1, %v5284_v4  ;;  %4723 = vmatmul.mubr.msk.f32.vlgmr.msra.gmra.mxu0 %vm290_vm1, %v257_v5  ;;  %v5315_v11 = vld [vmem:[%s5280_s25 + $0x21] sm:$0xff]  ;;  %v5325_v13 = vld [vmem:[%s5280_s25 + $0x31] sm:$0xff]  ;;  %v5343_v15 = vld [vmem:[%s5280_s25 + $0x39] sm:$0xff] }
  0x15   : > { %4747 = vmatmul.mubr.msk.f32.vlgmr.msra.gmra.mxu1 %vm290_vm1, %v5291_v6  ;;  %4821 = vmatpush3.msk.msra.mxu0 %vm387_vm0, %v3989_v2  ;;  %v5318_v12 = vld [vmem:[%s5280_s25 + $0xe1] sm:$0xff]  ;;  %v5328_v14 = vld [vmem:[%s5280_s25 + $0xf1] sm:$0xff]  ;;  %v5346_v16 = vld [vmem:[%s5280_s25 + $0xf9] sm:$0xff] }
  0x16   : > { %4771 = vmatpush3.msk.msra.mxu1 %vm387_vm0, %v255_v1  ;;  %4725 = vmatprep.mubr.msk.f32.mxu0 %vm290_vm1, %v5294_v7  ;;  %v5349_v17 = vld [vmem:[%s5280_s25 + $0x49] sm:$0xff]  ;;  %v5363_v19 = vld [vmem:[%s5280_s25 + $0x51] sm:$0xff]  ;;  %v5369_v21 = vld [vmem:[%s5280_s25 + $0x61] sm:$0xff] }
  0x17   : > { %4749 = vmatprep.mubr.msk.f32.mxu1 %vm290_vm1, %v5297_v8  ;;  %4870 = vmatprep.subr.msk.mxu1 %vm387_vm0, %v5305_v9  ;;  %v5352_v18 = vld [vmem:[%s5280_s25 + $0x109] sm:$0xff]  ;;  %v5366_v20 = vld [vmem:[%s5280_s25 + $0x111] sm:$0xff]  ;;  %v5372_v22 = vld [vmem:[%s5280_s25 + $0x121] sm:$0xff] }
  0x18   : > { %4920 = vmatprep.subr.msk.mxu0 %vm387_vm0, %v5310_v10  ;;  %4726 = vmatmul.mubr.msk.f32.gmra.mxu0 %vm290_vm1, %v5315_v11  ;;  %v5383_v23 = vld [vmem:[%s5280_s25 + $0x69] sm:$0xff]  ;;  %v5389_v25 = vld [vmem:[%s5280_s25 + $0x79] sm:$0xff]  ;;  %v5403_v27 = vld [vmem:[%s5280_s25 + $0x81] sm:$0xff] }
  0x19   : > { %4750 = vmatmul.mubr.msk.f32.gmra.mxu1 %vm290_vm1, %v5318_v12  ;;  %4728 = vmatprep.mubr.msk.f32.mxu0 %vm290_vm1, %v5325_v13  ;;  %v5386_v24 = vld [vmem:[%s5280_s25 + $0x129] sm:$0xff]  ;;  %v5392_v26 = vld [vmem:[%s5280_s25 + $0x139] sm:$0xff]  ;;  %v5406_v28 = vld [vmem:[%s5280_s25 + $0x141] sm:$0xff] }
  0x1a   : > { %4752 = vmatprep.mubr.msk.f32.mxu1 %vm290_vm1, %v5328_v14  ;;  %v5409_v29 = vld [vmem:[%s5280_s25 + $0x91] sm:$0xff]  ;;  %v5423_v31 = vld [vmem:[%s5280_s25 + $0x99] sm:$0xff]  ;;  %v5429_v33 = vld [vmem:[%s5280_s25 + $0xa9] sm:$0xff] }
  0x1b   : > { %v5412_v30 = vld [vmem:[%s5280_s25 + $0x151] sm:$0xff]  ;;  %v5426_v32 = vld [vmem:[%s5280_s25 + $0x159] sm:$0xff]  ;;  %v5432_v34 = vld [vmem:[%s5280_s25 + $0x169] sm:$0xff] }
  0x1c   : > { %4729 = vmatmul.mubr.msk.f32.gmra.mxu0 %vm290_vm1, %v5343_v15  ;;  %v5443_v35 = vld [vmem:[%s5280_s25 + $0xb1] sm:$0xff]  ;;  %v223_v37 = vld [vmem:[%s5280_s25] sm:$0xff]  ;;  %v224_v39 = vld [vmem:[%s5280_s25 + $0x8] sm:$0xff] }
  0x1d   : > { %4753 = vmatmul.mubr.msk.f32.gmra.mxu1 %vm290_vm1, %v5346_v16  ;;  %4731 = vmatprep.mubr.msk.f32.mxu0 %vm290_vm1, %v5349_v17  ;;  %v5446_v36 = vld [vmem:[%s5280_s25 + $0x171] sm:$0xff]  ;;  %v940_v38 = vld [vmem:[%s5280_s25 + $0x2] sm:$0xff]  ;;  %v5462_v42 = vld [vmem:[%s5280_s25 + $0x1a] sm:$0xff] }
  0x1e   : > { %4755 = vmatprep.mubr.msk.f32.mxu1 %vm290_vm1, %v5352_v18  ;;  %6856 = vst [vmem:[#allocation2_spill] sm:$0xff] %v5446_v36  ;;  %v941_v40 = vld [vmem:[%s5280_s25 + $0xa] sm:$0xff]  ;;  %v5459_v41 = vld [vmem:[%s5280_s25 + $0x18] sm:$0xff]  ;;  %6857 = vst [vmem:[#allocation3_spill] sm:$0xff] %v5462_v42 }
  0x1f   : > { %v5481_v45 = vld [vmem:[%s5280_s25 + $0x20] sm:$0xff]  ;;  %v5491_v47 = vld [vmem:[%s5280_s25 + $0x30] sm:$0xff]  ;;  %v5509_v49 = vld [vmem:[%s5280_s25 + $0x38] sm:$0xff] }
  0x20   : > { %4732 = vmatmul.mubr.msk.f32.gmra.mxu0 %vm290_vm1, %v5363_v19  ;;  %v5484_v46 = vld [vmem:[%s5280_s25 + $0x22] sm:$0xff]  ;;  %v5494_v48 = vld [vmem:[%s5280_s25 + $0x32] sm:$0xff]  ;;  %v5512_v50 = vld [vmem:[%s5280_s25 + $0x3a] sm:$0xff] }
  0x21   : > { %4756 = vmatmul.mubr.msk.f32.gmra.mxu1 %vm290_vm1, %v5366_v20  ;;  %4734 = vmatprep.mubr.msk.f32.mxu0 %vm290_vm1, %v5369_v21  ;;  %6858 = vst [vmem:[#allocation4_spill] sm:$0xff] %v5484_v46  ;;  %6859 = vst [vmem:[#allocation5_spill] sm:$0xff] %v5494_v48  ;;  %v5515_v51 = vld [vmem:[%s5280_s25 + $0x48] sm:$0xff]  ;;  %v5529_v53 = vld [vmem:[%s5280_s25 + $0x50] sm:$0xff] }
  0x22   : > { %4758 = vmatprep.mubr.msk.f32.mxu1 %vm290_vm1, %v5372_v22  ;;  %6860 = vst [vmem:[#allocation6_spill] sm:$0xff] %v5512_v50  ;;  %v5518_v52 = vld [vmem:[%s5280_s25 + $0x4a] sm:$0xff]  ;;  %v5532_v54 = vld [vmem:[%s5280_s25 + $0x52] sm:$0xff]  ;;  %v5535_v55 = vld [vmem:[%s5280_s25 + $0x60] sm:$0xff] }
  0x23   : > { %6861 = vst [vmem:[#allocation7_spill] sm:$0xff] %v5518_v52  ;;  %6862 = vst [vmem:[#allocation8_spill] sm:$0xff] %v5532_v54  ;;  %v5538_v56 = vld [vmem:[%s5280_s25 + $0x62] sm:$0xff]  ;;  %v5552_v58 = vld [vmem:[%s5280_s25 + $0x6a] sm:$0xff] }
  0x24   : > { %4735 = vmatmul.mubr.msk.f32.gmra.mxu0 %vm290_vm1, %v5383_v23  ;;  %6863 = vst [vmem:[#allocation9_spill] sm:$0xff] %v5538_v56  ;;  %v5549_v57 = vld [vmem:[%s5280_s25 + $0x68] sm:$0xff]  ;;  %6864 = vst [vmem:[#allocation10_spill] sm:$0xff] %v5552_v58  ;;  %v5555_v59 = vld [vmem:[%s5280_s25 + $0x78] sm:$0xff] }
  0x25   : > { %4759 = vmatmul.mubr.msk.f32.gmra.mxu1 %vm290_vm1, %v5386_v24  ;;  %4737 = vmatprep.mubr.msk.f32.mxu0 %vm290_vm1, %v5389_v25  ;;  %v5558_v60 = vld [vmem:[%s5280_s25 + $0x7a] sm:$0xff]  ;;  %v5572_v62 = vld [vmem:[%s5280_s25 + $0x82] sm:$0xff]  ;;  %v5575_v63 = vld [vmem:[%s5280_s25 + $0x90] sm:$0xff] }
  0x26   : > { %4761 = vmatprep.mubr.msk.f32.mxu1 %vm290_vm1, %v5392_v26  ;;  %6865 = vst [vmem:[#allocation11_spill] sm:$0xff] %v5558_v60  ;;  %v5569_v61 = vld [vmem:[%s5280_s25 + $0x80] sm:$0xff]  ;;  %6866 = vst [vmem:[#allocation12_spill] sm:$0xff] %v5572_v62  ;;  %v5578_v0 = vld [vmem:[%s5280_s25 + $0x92] sm:$0xff] }
  0x27   : > { %6867 = vst [vmem:[#allocation13_spill] sm:$0xff] %v5578_v0  ;;  %v5589_v1 = vld [vmem:[%s5280_s25 + $0x98] sm:$0xff]  ;;  %v5595_v3 = vld [vmem:[%s5280_s25 + $0xa8] sm:$0xff] }
  0x28   : > { %4738 = vmatmul.mubr.msk.f32.gmra.mxu0 %vm290_vm1, %v5403_v27  ;;  %v5592_v2 = vld [vmem:[%s5280_s25 + $0x9a] sm:$0xff]  ;;  %v5598_v5 = vld [vmem:[%s5280_s25 + $0xaa] sm:$0xff] }
  0x29   : > { %4762 = vmatmul.mubr.msk.f32.gmra.mxu1 %vm290_vm1, %v5406_v28  ;;  %4740 = vmatprep.mubr.msk.f32.mxu0 %vm290_vm1, %v5409_v29  ;;  %6868 = vst [vmem:[#allocation14_spill] sm:$0xff] %v5592_v2  ;;  %6869 = vst [vmem:[#allocation15_spill] sm:$0xff] %v5598_v5 }
  0x2a   : > { %4764 = vmatprep.mubr.msk.f32.mxu1 %vm290_vm1, %v5412_v30 }
  0x2c   : > { %4741 = vmatmul.mubr.msk.f32.gmra.mxu0 %vm290_vm1, %v5423_v31 }
  0x2d   : > { %4765 = vmatmul.mubr.msk.f32.gmra.mxu1 %vm290_vm1, %v5426_v32  ;;  %4743 = vmatprep.mubr.msk.f32.mxu0 %vm290_vm1, %v5429_v33 }
  0x2e   : > { %4767 = vmatprep.mubr.msk.f32.mxu1 %vm290_vm1, %v5432_v34 }
  0x30   : > { %4744 = vmatmul.mubr.msk.f32.gmra.mxu0 %vm290_vm1, %v5443_v35 }
  0x31   : > { %4768 = vmatmul.mubr.msk.f32.gmra.mxu1 %vm290_vm1, %v5446_v36  ;;  %4822 = vmatprep.mubr.msk.f32.mxu0 %vm290_vm1, %v940_v38  ;;  %v5618_v38 = vld [vmem:[%s5280_s25 + $0xc2] sm:$0xff]  ;;  %v5758_v36 = vld [vmem:[%s5280_s25 + $0x16a] sm:$0xff] }
  0x32   : > { %4772 = vmatprep.mubr.msk.f32.mxu1 %vm290_vm1, %v223_v37  ;;  %v5615_v37 = vld [vmem:[%s5280_s25 + $0xc0] sm:$0xff]  ;;  %6871 = vst [vmem:[#allocation17_spill] sm:$0xff] %v5618_v38  ;;  %6885 = vst [vmem:[#allocation31_spill] sm:$0xff] %v5758_v36 }
  0x34   : > { %4823 = vmatmul.mubr.msk.f32.vlgmr.msra.gmra.mxu0 %vm290_vm1, %v941_v40  ;;  %v5632_v40 = vld [vmem:[%s5280_s25 + $0xca] sm:$0xff] }
  0x35   : > { %4773 = vmatmul.mubr.msk.f32.vlgmr.msra.gmra.mxu1 %vm290_vm1, %v224_v39  ;;  %4921 = vmatpush3.msk.msra.mxu0 %vm387_vm0, %v5310_v10  ;;  %v5612_v10 = vld [vmem:[%s5280_s25 + $0xb2] sm:$0xff]  ;;  %v5629_v39 = vld [vmem:[%s5280_s25 + $0xc8] sm:$0xff]  ;;  %6872 = vst [vmem:[#allocation18_spill] sm:$0xff] %v5632_v40 }
  0x36   : > { %4871 = vmatpush3.msk.msra.mxu1 %vm387_vm0, %v5305_v9  ;;  %4775 = vmatprep.mubr.msk.f32.mxu1 %vm290_vm1, %v5459_v41  ;;  %v5609_v9 = vld [vmem:[%s5280_s25 + $0xb0] sm:$0xff]  ;;  %6870 = vst [vmem:[#allocation16_spill] sm:$0xff] %v5612_v10 }
  0x37   : > { %4825 = vmatprep.mubr.msk.f32.mxu0 %vm290_vm1, %v5462_v42  ;;  %4970 = vmatprep.subr.msk.mxu1 %vm387_vm0, %v5469_v43  ;;  %v5755_v42 = vld [vmem:[%s5280_s25 + $0x168] sm:$0xff] }
  0x38   : > { %5020 = vmatprep.subr.msk.mxu0 %vm387_vm0, %v5474_v44  ;;  %4826 = vmatmul.mubr.msk.f32.gmra.mxu0 %vm290_vm1, %v5484_v46  ;;  %v5738_v46 = vld [vmem:[%s5280_s25 + $0x152] sm:$0xff] }
  0x39   : > { %4776 = vmatmul.mubr.msk.f32.gmra.mxu1 %vm290_vm1, %v5481_v45  ;;  %4828 = vmatprep.mubr.msk.f32.mxu0 %vm290_vm1, %v5494_v48  ;;  %v5735_v48 = vld [vmem:[%s5280_s25 + $0x150] sm:$0xff]  ;;  %6883 = vst [vmem:[#allocation29_spill] sm:$0xff] %v5738_v46 }
  0x3a   : > { %4778 = vmatprep.mubr.msk.f32.mxu1 %vm290_vm1, %v5491_v47 }
  0x3c   : > { %4829 = vmatmul.mubr.msk.f32.gmra.mxu0 %vm290_vm1, %v5512_v50  ;;  %v5718_v50 = vld [vmem:[%s5280_s25 + $0x13a] sm:$0xff] }
  0x3d   : > { %4779 = vmatmul.mubr.msk.f32.gmra.mxu1 %vm290_vm1, %v5509_v49  ;;  %4831 = vmatprep.mubr.msk.f32.mxu0 %vm290_vm1, %v5518_v52  ;;  %v5715_v52 = vld [vmem:[%s5280_s25 + $0x138] sm:$0xff]  ;;  %6881 = vst [vmem:[#allocation27_spill] sm:$0xff] %v5718_v50 }
  0x3e   : > { %4781 = vmatprep.mubr.msk.f32.mxu1 %vm290_vm1, %v5515_v51 }
  0x40   : > { %4832 = vmatmul.mubr.msk.f32.gmra.mxu0 %vm290_vm1, %v5532_v54  ;;  %v5698_v54 = vld [vmem:[%s5280_s25 + $0x122] sm:$0xff] }
  0x41   : > { %4782 = vmatmul.mubr.msk.f32.gmra.mxu1 %vm290_vm1, %v5529_v53  ;;  %4834 = vmatprep.mubr.msk.f32.mxu0 %vm290_vm1, %v5538_v56  ;;  %v5695_v56 = vld [vmem:[%s5280_s25 + $0x120] sm:$0xff]  ;;  %6879 = vst [vmem:[#allocation25_spill] sm:$0xff] %v5698_v54 }
  0x42   : > { %4784 = vmatprep.mubr.msk.f32.mxu1 %vm290_vm1, %v5535_v55 }
  0x44   : > { %4835 = vmatmul.mubr.msk.f32.gmra.mxu0 %vm290_vm1, %v5552_v58  ;;  %v5678_v58 = vld [vmem:[%s5280_s25 + $0x10a] sm:$0xff] }
  0x45   : > { %4785 = vmatmul.mubr.msk.f32.gmra.mxu1 %vm290_vm1, %v5549_v57  ;;  %4837 = vmatprep.mubr.msk.f32.mxu0 %vm290_vm1, %v5558_v60  ;;  %v5675_v60 = vld [vmem:[%s5280_s25 + $0x108] sm:$0xff]  ;;  %6877 = vst [vmem:[#allocation23_spill] sm:$0xff] %v5678_v58 }
  0x46   : > { %4787 = vmatprep.mubr.msk.f32.mxu1 %vm290_vm1, %v5555_v59 }
  0x48   : > { %4838 = vmatmul.mubr.msk.f32.gmra.mxu0 %vm290_vm1, %v5572_v62  ;;  %v5658_v62 = vld [vmem:[%s5280_s25 + $0xf2] sm:$0xff] }
  0x49   : > { %4788 = vmatmul.mubr.msk.f32.gmra.mxu1 %vm290_vm1, %v5569_v61  ;;  %4840 = vmatprep.mubr.msk.f32.mxu0 %vm290_vm1, %v5578_v0  ;;  %v5655_v0 = vld [vmem:[%s5280_s25 + $0xf0] sm:$0xff]  ;;  %6875 = vst [vmem:[#allocation21_spill] sm:$0xff] %v5658_v62 }
  0x4a   : > { %4790 = vmatprep.mubr.msk.f32.mxu1 %vm290_vm1, %v5575_v63 }
  0x4c   : > { %4841 = vmatmul.mubr.msk.f32.gmra.mxu0 %vm290_vm1, %v5592_v2  ;;  %v5638_v2 = vld [vmem:[%s5280_s25 + $0xda] sm:$0xff] }
  0x4d   : > { %4791 = vmatmul.mubr.msk.f32.gmra.mxu1 %vm290_vm1, %v5589_v1  ;;  %4843 = vmatprep.mubr.msk.f32.mxu0 %vm290_vm1, %v5598_v5  ;;  %v5635_v5 = vld [vmem:[%s5280_s25 + $0xd8] sm:$0xff]  ;;  %6873 = vst [vmem:[#allocation19_spill] sm:$0xff] %v5638_v2 }
  0x4e   : > { %4793 = vmatprep.mubr.msk.f32.mxu1 %vm290_vm1, %v5595_v3 }
  0x50   : > { %4844 = vmatmul.mubr.msk.f32.gmra.mxu0 %vm290_vm1, %v5612_v10  ;;  %v5652_v10 = vld [vmem:[%s5280_s25 + $0xe2] sm:$0xff] }
  0x51   : > { %4794 = vmatmul.mubr.msk.f32.gmra.mxu1 %vm290_vm1, %v5609_v9  ;;  %4846 = vmatprep.mubr.msk.f32.mxu0 %vm290_vm1, %v5618_v38  ;;  %v5649_v38 = vld [vmem:[%s5280_s25 + $0xe0] sm:$0xff]  ;;  %6874 = vst [vmem:[#allocation20_spill] sm:$0xff] %v5652_v10 }
  0x52   : > { %4796 = vmatprep.mubr.msk.f32.mxu1 %vm290_vm1, %v5615_v37 }
  0x54   : > { %4847 = vmatmul.mubr.msk.f32.gmra.mxu0 %vm290_vm1, %v5632_v40  ;;  %v5672_v40 = vld [vmem:[%s5280_s25 + $0xfa] sm:$0xff] }
  0x55   : > { %4797 = vmatmul.mubr.msk.f32.gmra.mxu1 %vm290_vm1, %v5629_v39  ;;  %4849 = vmatprep.mubr.msk.f32.mxu0 %vm290_vm1, %v5638_v2  ;;  %v5669_v2 = vld [vmem:[%s5280_s25 + $0xf8] sm:$0xff]  ;;  %6876 = vst [vmem:[#allocation22_spill] sm:$0xff] %v5672_v40 }
  0x56   : > { %4799 = vmatprep.mubr.msk.f32.mxu1 %vm290_vm1, %v5635_v5 }
  0x58   : > { %4850 = vmatmul.mubr.msk.f32.gmra.mxu0 %vm290_vm1, %v5652_v10  ;;  %v5692_v10 = vld [vmem:[%s5280_s25 + $0x112] sm:$0xff] }
  0x59   : > { %4800 = vmatmul.mubr.msk.f32.gmra.mxu1 %vm290_vm1, %v5649_v38  ;;  %4852 = vmatprep.mubr.msk.f32.mxu0 %vm290_vm1, %v5658_v62  ;;  %v5689_v62 = vld [vmem:[%s5280_s25 + $0x110] sm:$0xff]  ;;  %6878 = vst [vmem:[#allocation24_spill] sm:$0xff] %v5692_v10 }
  0x5a   : > { %4802 = vmatprep.mubr.msk.f32.mxu1 %vm290_vm1, %v5655_v0 }
  0x5c   : > { %4853 = vmatmul.mubr.msk.f32.gmra.mxu0 %vm290_vm1, %v5672_v40  ;;  %v5712_v40 = vld [vmem:[%s5280_s25 + $0x12a] sm:$0xff] }
  0x5d   : > { %4803 = vmatmul.mubr.msk.f32.gmra.mxu1 %vm290_vm1, %v5669_v2  ;;  %4855 = vmatprep.mubr.msk.f32.mxu0 %vm290_vm1, %v5678_v58  ;;  %v5709_v58 = vld [vmem:[%s5280_s25 + $0x128] sm:$0xff]  ;;  %6880 = vst [vmem:[#allocation26_spill] sm:$0xff] %v5712_v40 }
  0x5e   : > { %4805 = vmatprep.mubr.msk.f32.mxu1 %vm290_vm1, %v5675_v60 }
  0x60   : > { %4856 = vmatmul.mubr.msk.f32.gmra.mxu0 %vm290_vm1, %v5692_v10  ;;  %v5732_v10 = vld [vmem:[%s5280_s25 + $0x142] sm:$0xff] }
  0x61   : > { %4806 = vmatmul.mubr.msk.f32.gmra.mxu1 %vm290_vm1, %v5689_v62  ;;  %4858 = vmatprep.mubr.msk.f32.mxu0 %vm290_vm1, %v5698_v54  ;;  %v5729_v54 = vld [vmem:[%s5280_s25 + $0x140] sm:$0xff]  ;;  %6882 = vst [vmem:[#allocation28_spill] sm:$0xff] %v5732_v10 }
  0x62   : > { %4808 = vmatprep.mubr.msk.f32.mxu1 %vm290_vm1, %v5695_v56 }
  0x64   : > { %4859 = vmatmul.mubr.msk.f32.gmra.mxu0 %vm290_vm1, %v5712_v40  ;;  %v5752_v40 = vld [vmem:[%s5280_s25 + $0x15a] sm:$0xff] }
  0x65   : > { %4809 = vmatmul.mubr.msk.f32.gmra.mxu1 %vm290_vm1, %v5709_v58  ;;  %4861 = vmatprep.mubr.msk.f32.mxu0 %vm290_vm1, %v5718_v50  ;;  %v5749_v50 = vld [vmem:[%s5280_s25 + $0x158] sm:$0xff]  ;;  %6884 = vst [vmem:[#allocation30_spill] sm:$0xff] %v5752_v40 }
  0x66   : > { %4811 = vmatprep.mubr.msk.f32.mxu1 %vm290_vm1, %v5715_v52 }
  0x68   : > { %4862 = vmatmul.mubr.msk.f32.gmra.mxu0 %vm290_vm1, %v5732_v10  ;;  %v5772_v10 = vld [vmem:[%s5280_s25 + $0x172] sm:$0xff] }
  0x69   : > { %4812 = vmatmul.mubr.msk.f32.gmra.mxu1 %vm290_vm1, %v5729_v54  ;;  %4864 = vmatprep.mubr.msk.f32.mxu0 %vm290_vm1, %v5738_v46  ;;  %v5769_v46 = vld [vmem:[%s5280_s25 + $0x170] sm:$0xff]  ;;  %6886 = vst [vmem:[#allocation32_spill] sm:$0xff] %v5772_v10 }
  0x6a   : > { %4814 = vmatprep.mubr.msk.f32.mxu1 %vm290_vm1, %v5735_v48 }
  0x6c   : > { %4865 = vmatmul.mubr.msk.f32.gmra.mxu0 %vm290_vm1, %v5752_v40 }
  0x6d   : > { %4815 = vmatmul.mubr.msk.f32.gmra.mxu1 %vm290_vm1, %v5749_v50  ;;  %4867 = vmatprep.mubr.msk.f32.mxu0 %vm290_vm1, %v5758_v36  ;;  %v5789_v36 = vld [vmem:[%s6793_s1 + $0x1c] sm:$0xf] }
  0x6e   : > { %4817 = vmatprep.mubr.msk.f32.mxu1 %vm290_vm1, %v5755_v42 }
  0x70   : > { %4868 = vmatmul.mubr.msk.f32.gmra.mxu0 %vm290_vm1, %v5772_v10  ;;  %v5794_v10 = vld [vmem:[%s6793_s1 + $0x20] sm:$0xf] }
  0x71   : > { %4818 = vmatmul.mubr.msk.f32.gmra.mxu1 %vm290_vm1, %v5769_v46  ;;  %4922 = vmatprep.mubr.msk.f32.mxu0 %vm290_vm1, %v5294_v7  ;;  %v6888_v7 = vld [vmem:[#allocation2_spill] sm:$0xff] }
  0x72   : > { %4872 = vmatprep.mubr.msk.f32.mxu1 %vm290_vm1, %v5459_v41 }
  0x74   : > { %4923 = vmatmul.mubr.msk.f32.vlgmr.msra.gmra.mxu0 %vm290_vm1, %v5315_v11  ;;  %v5930_v11 = vld [vmem:[%s5280_s25 + $0x189] sm:$0xff] }
  0x75   : > { %4873 = vmatmul.mubr.msk.f32.vlgmr.msra.gmra.mxu1 %vm290_vm1, %v5481_v45  ;;  %5021 = vmatpush3.msk.msra.mxu0 %vm387_vm0, %v5474_v44  ;;  %6889 = vst [vmem:[#allocation2_spill] sm:$0xff] %v5930_v11  ;;  %v6907_v44 = vld [vmem:[#allocation20_spill] sm:$0xff]  ;;  %v6908_v45 = vld [vmem:[#allocation21_spill] sm:$0xff] }
  0x76   : > { %4971 = vmatpush3.msk.msra.mxu1 %vm387_vm0, %v5469_v43  ;;  %4875 = vmatprep.mubr.msk.f32.mxu1 %vm290_vm1, %v5491_v47 }
  0x77   : > { %4925 = vmatprep.mubr.msk.f32.mxu0 %vm290_vm1, %v5325_v13  ;;  %5070 = vmatprep.subr.msk.mxu1 %vm387_vm0, %v5789_v36 }
  0x78   : > { %5120 = vmatprep.subr.msk.mxu0 %vm387_vm0, %v5794_v10  ;;  %4926 = vmatmul.mubr.msk.f32.gmra.mxu0 %vm290_vm1, %v5343_v15 }
  0x79   : > { %4876 = vmatmul.mubr.msk.f32.gmra.mxu1 %vm290_vm1, %v5509_v49  ;;  %4928 = vmatprep.mubr.msk.f32.mxu0 %vm290_vm1, %v5349_v17 }
  0x7a   : > { %4878 = vmatprep.mubr.msk.f32.mxu1 %vm290_vm1, %v5515_v51 }
  0x7c   : > { %4929 = vmatmul.mubr.msk.f32.gmra.mxu0 %vm290_vm1, %v5363_v19 }
  0x7d   : > { %4879 = vmatmul.mubr.msk.f32.gmra.mxu1 %vm290_vm1, %v5529_v53  ;;  %4931 = vmatprep.mubr.msk.f32.mxu0 %vm290_vm1, %v5369_v21 }
  0x7e   : > { %4881 = vmatprep.mubr.msk.f32.mxu1 %vm290_vm1, %v5535_v55 }
  0x80   : > { %4932 = vmatmul.mubr.msk.f32.gmra.mxu0 %vm290_vm1, %v5383_v23 }
  0x81   : > { %4882 = vmatmul.mubr.msk.f32.gmra.mxu1 %vm290_vm1, %v5549_v57  ;;  %4934 = vmatprep.mubr.msk.f32.mxu0 %vm290_vm1, %v5389_v25 }
  0x82   : > { %4884 = vmatprep.mubr.msk.f32.mxu1 %vm290_vm1, %v5555_v59 }
  0x84   : > { %4935 = vmatmul.mubr.msk.f32.gmra.mxu0 %vm290_vm1, %v5403_v27 }
  0x85   : > { %4885 = vmatmul.mubr.msk.f32.gmra.mxu1 %vm290_vm1, %v5569_v61  ;;  %4937 = vmatprep.mubr.msk.f32.mxu0 %vm290_vm1, %v5409_v29  ;;  %v6899_v29 = vld [vmem:[#allocation12_spill] sm:$0xff] }
  0x86   : > { %4887 = vmatprep.mubr.msk.f32.mxu1 %vm290_vm1, %v5575_v63 }
  0x88   : > { %4938 = vmatmul.mubr.msk.f32.gmra.mxu0 %vm290_vm1, %v5423_v31  ;;  %v6901_v31 = vld [vmem:[#allocation14_spill] sm:$0xff] }
  0x89   : > { %4888 = vmatmul.mubr.msk.f32.gmra.mxu1 %vm290_vm1, %v5589_v1  ;;  %4940 = vmatprep.mubr.msk.f32.mxu0 %vm290_vm1, %v5429_v33  ;;  %v6903_v33 = vld [vmem:[#allocation16_spill] sm:$0xff] }
  0x8a   : > { %4890 = vmatprep.mubr.msk.f32.mxu1 %vm290_vm1, %v5595_v3 }
  0x8c   : > { %4941 = vmatmul.mubr.msk.f32.gmra.mxu0 %vm290_vm1, %v5443_v35  ;;  %v6905_v35 = vld [vmem:[#allocation18_spill] sm:$0xff] }
  0x8d   : > { %4891 = vmatmul.mubr.msk.f32.gmra.mxu1 %vm290_vm1, %v5609_v9  ;;  %4943 = vmatprep.mubr.msk.f32.mxu0 %vm290_vm1, %v5284_v4  ;;  %v5913_v4 = vld [vmem:[%s5280_s25 + $0x180] sm:$0xff] }
  0x8e   : > { %4893 = vmatprep.mubr.msk.f32.mxu1 %vm290_vm1, %v5615_v37 }
  0x90   : > { %4944 = vmatmul.mubr.msk.f32.gmra.mxu0 %vm290_vm1, %v5291_v6  ;;  %v5916_v6 = vld [vmem:[%s5280_s25 + $0x181] sm:$0xff] }
  0x91   : > { %4894 = vmatmul.mubr.msk.f32.gmra.mxu1 %vm290_vm1, %v5629_v39  ;;  %4946 = vmatprep.mubr.msk.f32.mxu0 %vm290_vm1, %v5297_v8  ;;  %6887 = vst [vmem:[#allocation33_spill] sm:$0xff] %v5916_v6  ;;  %v5927_v8 = vld [vmem:[%s5280_s25 + $0x188] sm:$0xff] }
  0x92   : > { %4896 = vmatprep.mubr.msk.f32.mxu1 %vm290_vm1, %v5635_v5 }
  0x94   : > { %4947 = vmatmul.mubr.msk.f32.gmra.mxu0 %vm290_vm1, %v5318_v12  ;;  %v6890_v12 = vld [vmem:[#allocation3_spill] sm:$0xff] }
  0x95   : > { %4897 = vmatmul.mubr.msk.f32.gmra.mxu1 %vm290_vm1, %v5649_v38  ;;  %4949 = vmatprep.mubr.msk.f32.mxu0 %vm290_vm1, %v5328_v14  ;;  %v6891_v14 = vld [vmem:[#allocation4_spill] sm:$0xff] }
  0x96   : > { %4899 = vmatprep.mubr.msk.f32.mxu1 %vm290_vm1, %v5655_v0 }
  0x98   : > { %4950 = vmatmul.mubr.msk.f32.gmra.mxu0 %vm290_vm1, %v5346_v16  ;;  %v6892_v16 = vld [vmem:[#allocation5_spill] sm:$0xff] }
  0x99   : > { %4900 = vmatmul.mubr.msk.f32.gmra.mxu1 %vm290_vm1, %v5669_v2  ;;  %4952 = vmatprep.mubr.msk.f32.mxu0 %vm290_vm1, %v5352_v18  ;;  %v6893_v18 = vld [vmem:[#allocation6_spill] sm:$0xff] }
  0x9a   : > { %4902 = vmatprep.mubr.msk.f32.mxu1 %vm290_vm1, %v5675_v60 }
  0x9c   : > { %4953 = vmatmul.mubr.msk.f32.gmra.mxu0 %vm290_vm1, %v5366_v20  ;;  %v6894_v20 = vld [vmem:[#allocation7_spill] sm:$0xff] }
  0x9d   : > { %4903 = vmatmul.mubr.msk.f32.gmra.mxu1 %vm290_vm1, %v5689_v62  ;;  %4955 = vmatprep.mubr.msk.f32.mxu0 %vm290_vm1, %v5372_v22  ;;  %v6895_v22 = vld [vmem:[#allocation8_spill] sm:$0xff] }
  0x9e   : > { %4905 = vmatprep.mubr.msk.f32.mxu1 %vm290_vm1, %v5695_v56 }
  0xa0   : > { %4956 = vmatmul.mubr.msk.f32.gmra.mxu0 %vm290_vm1, %v5386_v24  ;;  %v6896_v24 = vld [vmem:[#allocation9_spill] sm:$0xff] }
  0xa1   : > { %4906 = vmatmul.mubr.msk.f32.gmra.mxu1 %vm290_vm1, %v5709_v58  ;;  %4958 = vmatprep.mubr.msk.f32.mxu0 %vm290_vm1, %v5392_v26  ;;  %v6897_v26 = vld [vmem:[#allocation10_spill] sm:$0xff] }
  0xa2   : > { %4908 = vmatprep.mubr.msk.f32.mxu1 %vm290_vm1, %v5715_v52 }
  0xa4   : > { %4959 = vmatmul.mubr.msk.f32.gmra.mxu0 %vm290_vm1, %v5406_v28  ;;  %v6898_v28 = vld [vmem:[#allocation11_spill] sm:$0xff] }
  0xa5   : > { %4909 = vmatmul.mubr.msk.f32.gmra.mxu1 %vm290_vm1, %v5729_v54  ;;  %4961 = vmatprep.mubr.msk.f32.mxu0 %vm290_vm1, %v5412_v30  ;;  %v6900_v30 = vld [vmem:[#allocation13_spill] sm:$0xff] }
  0xa6   : > { %4911 = vmatprep.mubr.msk.f32.mxu1 %vm290_vm1, %v5735_v48 }
  0xa8   : > { %4962 = vmatmul.mubr.msk.f32.gmra.mxu0 %vm290_vm1, %v5426_v32  ;;  %v6902_v32 = vld [vmem:[#allocation15_spill] sm:$0xff] }
  0xa9   : > { %4912 = vmatmul.mubr.msk.f32.gmra.mxu1 %vm290_vm1, %v5749_v50  ;;  %4964 = vmatprep.mubr.msk.f32.mxu0 %vm290_vm1, %v5432_v34  ;;  %v6904_v34 = vld [vmem:[#allocation17_spill] sm:$0xff] }
  0xaa   : > { %4914 = vmatprep.mubr.msk.f32.mxu1 %vm290_vm1, %v5755_v42 }
  0xac   : > { %4965 = vmatmul.mubr.msk.f32.gmra.mxu0 %vm290_vm1, %v6888_v7 }
  0xad   : > { %4915 = vmatmul.mubr.msk.f32.gmra.mxu1 %vm290_vm1, %v5769_v46  ;;  %4967 = vmatprep.mubr.msk.f32.mxu0 %vm290_vm1, %v5916_v6  ;;  %v4251_v6 = vld [vmem:[%s5280_s25 + $0x198] sm:$0xff] }
  0xae   : > { %4917 = vmatprep.mubr.msk.f32.mxu1 %vm290_vm1, %v5913_v4 }
  0xb0   : > { %4968 = vmatmul.mubr.msk.f32.gmra.mxu0 %vm290_vm1, %v5930_v11  ;;  %v6105_v11 = vld [vmem:[%s5280_s25 + $0x182] sm:$0xff] }
  0xb1   : > { %4918 = vmatmul.mubr.msk.f32.gmra.mxu1 %vm290_vm1, %v5927_v8  ;;  %5022 = vmatprep.mubr.msk.f32.mxu0 %vm290_vm1, %v5491_v47  ;;  %6922 = vst [vmem:[#allocation7_spill] sm:$0xff] %v6105_v11 }
  0xb2   : > { %4972 = vmatprep.mubr.msk.f32.mxu1 %vm290_vm1, %v6890_v12 }
  0xb4   : > { %5023 = vmatmul.mubr.msk.f32.vlgmr.msra.gmra.mxu0 %vm290_vm1, %v5509_v49 }
  0xb5   : > { %4973 = vmatmul.mubr.msk.f32.vlgmr.msra.gmra.mxu1 %vm290_vm1, %v6891_v14  ;;  %5121 = vmatpush3.msk.msra.mxu0 %vm387_vm0, %v5794_v10 }
  0xb6   : > { %5071 = vmatpush3.msk.msra.mxu1 %vm387_vm0, %v5789_v36  ;;  %4975 = vmatprep.mubr.msk.f32.mxu1 %vm290_vm1, %v6892_v16  ;;  %v6906_v36 = vld [vmem:[#allocation19_spill] sm:$0xff] }
  0xb7   : > { %5025 = vmatprep.mubr.msk.f32.mxu0 %vm290_vm1, %v5515_v51 }
  0xb8   : > { %5026 = vmatmul.mubr.msk.f32.gmra.mxu0 %vm290_vm1, %v5529_v53 }
  0xb9   : > { %4976 = vmatmul.mubr.msk.f32.gmra.mxu1 %vm290_vm1, %v6893_v18  ;;  %5028 = vmatprep.mubr.msk.f32.mxu0 %vm290_vm1, %v5535_v55  ;;  %v6909_v55 = vld [vmem:[#allocation22_spill] sm:$0xff] }
  0xba   : > { %4978 = vmatprep.mubr.msk.f32.mxu1 %vm290_vm1, %v6894_v20 }
  0xbc   : > { %5029 = vmatmul.mubr.msk.f32.gmra.mxu0 %vm290_vm1, %v5549_v57  ;;  %v6910_v57 = vld [vmem:[#allocation23_spill] sm:$0xff] }
  0xbd   : > { %4979 = vmatmul.mubr.msk.f32.gmra.mxu1 %vm290_vm1, %v6895_v22  ;;  %5031 = vmatprep.mubr.msk.f32.mxu0 %vm290_vm1, %v5555_v59 }
  0xbe   : > { %4981 = vmatprep.mubr.msk.f32.mxu1 %vm290_vm1, %v6896_v24 }
  0xc0   : > { %5032 = vmatmul.mubr.msk.f32.gmra.mxu0 %vm290_vm1, %v5569_v61 }
  0xc1   : > { %4982 = vmatmul.mubr.msk.f32.gmra.mxu1 %vm290_vm1, %v6897_v26  ;;  %5034 = vmatprep.mubr.msk.f32.mxu0 %vm290_vm1, %v5575_v63 }
  0xc2   : > { %4984 = vmatprep.mubr.msk.f32.mxu1 %vm290_vm1, %v6898_v28 }
  0xc4   : > { %5035 = vmatmul.mubr.msk.f32.gmra.mxu0 %vm290_vm1, %v5589_v1 }
  0xc5   : > { %4985 = vmatmul.mubr.msk.f32.gmra.mxu1 %vm290_vm1, %v6899_v29  ;;  %5037 = vmatprep.mubr.msk.f32.mxu0 %vm290_vm1, %v5595_v3 }
  0xc6   : > { %4987 = vmatprep.mubr.msk.f32.mxu1 %vm290_vm1, %v6900_v30 }
  0xc8   : > { %5038 = vmatmul.mubr.msk.f32.gmra.mxu0 %vm290_vm1, %v5609_v9 }
  0xc9   : > { %4988 = vmatmul.mubr.msk.f32.gmra.mxu1 %vm290_vm1, %v6901_v31  ;;  %5040 = vmatprep.mubr.msk.f32.mxu0 %vm290_vm1, %v5615_v37 }
  0xca   : > { %4990 = vmatprep.mubr.msk.f32.mxu1 %vm290_vm1, %v6902_v32 }
  0xcc   : > { %5041 = vmatmul.mubr.msk.f32.gmra.mxu0 %vm290_vm1, %v5629_v39 }
  0xcd   : > { %4991 = vmatmul.mubr.msk.f32.gmra.mxu1 %vm290_vm1, %v6903_v33  ;;  %5043 = vmatprep.mubr.msk.f32.mxu0 %vm290_vm1, %v5635_v5  ;;  %v6913_v5 = vld [vmem:[#allocation26_spill] sm:$0xff] }
  0xce   : > { %4993 = vmatprep.mubr.msk.f32.mxu1 %vm290_vm1, %v6904_v34 }
  0xd0   : > { %5044 = vmatmul.mubr.msk.f32.gmra.mxu0 %vm290_vm1, %v5649_v38  ;;  %v6916_v38 = vld [vmem:[#allocation28_spill] sm:$0xff] }
  0xd1   : > { %4994 = vmatmul.mubr.msk.f32.gmra.mxu1 %vm290_vm1, %v6905_v35  ;;  %5046 = vmatprep.mubr.msk.f32.mxu0 %vm290_vm1, %v5655_v0  ;;  %v6911_v0 = vld [vmem:[#allocation24_spill] sm:$0xff] }
  0xd2   : > { %4996 = vmatprep.mubr.msk.f32.mxu1 %vm290_vm1, %v6906_v36 }
  0xd4   : > { %v6008_v41 = vpop.f32.mrf.mxu0  ;;  %5047 = vmatmul.mubr.msk.f32.gmra.mxu0 %vm290_vm1, %v5669_v2 }
  0xd5   : > { %v6010_v43 = vpop.f32.mrf.mxu1  ;;  %4997 = vmatmul.mubr.msk.f32.gmra.mxu1 %vm290_vm1, %v6907_v44  ;;  %5049 = vmatprep.mubr.msk.f32.mxu0 %vm290_vm1, %v5675_v60 }
  0xd6   : > { %4999 = vmatprep.mubr.msk.f32.mxu1 %vm290_vm1, %v6908_v45  ;;  %v6020_v47 = vpop.f32.mrf.mxu0 }
  0xd7   : > { %v6022_v49 = vpop.f32.mrf.mxu1 }
  0xd8   : > { %v6024_v51 = vpop.f32.mrf.mxu0  ;;  %5050 = vmatmul.mubr.msk.f32.gmra.mxu0 %vm290_vm1, %v5689_v62  ;;  %v6912_v62 = vld [vmem:[#allocation25_spill] sm:$0xff] }
  0xd9   : > { %v6026_v53 = vpop.f32.mrf.mxu1  ;;  %5000 = vmatmul.mubr.msk.f32.gmra.mxu1 %vm290_vm1, %v6909_v55  ;;  %5052 = vmatprep.mubr.msk.f32.mxu0 %vm290_vm1, %v5695_v56 }
  0xda   : > { %5002 = vmatprep.mubr.msk.f32.mxu1 %vm290_vm1, %v6910_v57  ;;  %v6036_v59 = vpop.f32.mrf.mxu0 }
  0xdb   : > { %v6038_v60 = vpop.f32.mrf.mxu1 }
  0xdc   : > { %v6040_v61 = vpop.f32.mrf.mxu0  ;;  %5053 = vmatmul.mubr.msk.f32.gmra.mxu0 %vm290_vm1, %v5709_v58  ;;  %v6914_v58 = vld [vmem:[#allocation27_spill] sm:$0xff] }
  0xdd   : > { %v6042_v63 = vpop.f32.mrf.mxu1  ;;  %5003 = vmatmul.mubr.msk.f32.gmra.mxu1 %vm290_vm1, %v6911_v0  ;;  %5055 = vmatprep.mubr.msk.f32.mxu0 %vm290_vm1, %v5715_v52 }
  0xde   : > { %5005 = vmatprep.mubr.msk.f32.mxu1 %vm290_vm1, %v6912_v62  ;;  %v6052_v56 = vpop.f32.mrf.mxu0 }
  0xdf   : > { %v6054_v1 = vpop.f32.mrf.mxu1 }
  0xe0   : > { %v6056_v2 = vpop.f32.mrf.mxu0  ;;  %5056 = vmatmul.mubr.msk.f32.gmra.mxu0 %vm290_vm1, %v5729_v54  ;;  %v6917_v54 = vld [vmem:[#allocation29_spill] sm:$0xff] }
  0xe1   : > { %v6058_v3 = vpop.f32.mrf.mxu1  ;;  %5006 = vmatmul.mubr.msk.f32.gmra.mxu1 %vm290_vm1, %v6913_v5  ;;  %5058 = vmatprep.mubr.msk.f32.mxu0 %vm290_vm1, %v5735_v48 }
  0xe2   : > { %5008 = vmatprep.mubr.msk.f32.mxu1 %vm290_vm1, %v6914_v58  ;;  %v6068_v52 = vpop.f32.mrf.mxu0 }
  0xe3   : > { %v6070_v9 = vpop.f32.mrf.mxu1 }
  0xe4   : > { %v6072_v10 = vpop.f32.mrf.mxu0  ;;  %5059 = vmatmul.mubr.msk.f32.gmra.mxu0 %vm290_vm1, %v5749_v50  ;;  %v6920_v50 = vld [vmem:[#allocation31_spill] sm:$0xff] }
  0xe5   : > { %v6074_v37 = vpop.f32.mrf.mxu1  ;;  %5009 = vmatmul.mubr.msk.f32.gmra.mxu1 %vm290_vm1, %v6916_v38  ;;  %5061 = vmatprep.mubr.msk.f32.mxu0 %vm290_vm1, %v5755_v42 }
  0xe6   : > { %6915 = vst [vmem:[#allocation3_spill] sm:$0xff] %v6074_v37  ;;  %5011 = vmatprep.mubr.msk.f32.mxu1 %vm290_vm1, %v6917_v54  ;;  %v6084_v48 = vpop.f32.mrf.mxu0  ;;  %v6924_v37 = vld [vmem:[#allocation32_spill] sm:$0xff] }
  0xe7   : > { %v6086_v39 = vpop.f32.mrf.mxu1 }
  0xe8   : > { %6918 = vst [vmem:[#allocation4_spill] sm:$0xff] %v6086_v39  ;;  %v6088_v7 = vpop.f32.mrf.mxu0  ;;  %5062 = vmatmul.mubr.msk.f32.gmra.mxu0 %vm290_vm1, %v5769_v46  ;;  %v6120_v46 = vld [vmem:[%s5280_s25 + $0x18a] sm:$0xff] }
  0xe9   : > { %v6090_v12 = vpop.f32.mrf.mxu1  ;;  %5012 = vmatmul.mubr.msk.f32.gmra.mxu1 %vm290_vm1, %v5752_v40  ;;  %5064 = vmatprep.mubr.msk.f32.mxu0 %vm290_vm1, %v5913_v4  ;;  %6925 = vst [vmem:[#allocation9_spill] sm:$0xff] %v6120_v46  ;;  %v4252_v4 = vld [vmem:[%s5280_s25 + $0x1a0] sm:$0xff] }
  0xea   : > { %6919 = vst [vmem:[#allocation5_spill] sm:$0xff] %v6090_v12  ;;  %5014 = vmatprep.mubr.msk.f32.mxu1 %vm290_vm1, %v6920_v50  ;;  %v6100_v42 = vpop.f32.mrf.mxu0 }
  0xeb   : > { %v6102_v14 = vpop.f32.mrf.mxu1 }
  0xec   : > { %6921 = vst [vmem:[#allocation6_spill] sm:$0xff] %v6102_v14  ;;  %v6108_v12 = vpop.f32.mrf.mxu0  ;;  %5065 = vmatmul.mubr.msk.f32.gmra.mxu0 %vm290_vm1, %v5927_v8 }
  0xed   : > { %v6110_v39 = vpop.f32.mrf.mxu1  ;;  %5015 = vmatmul.mubr.msk.f32.gmra.mxu1 %vm290_vm1, %v6924_v37  ;;  %5067 = vmatprep.mubr.msk.f32.mxu0 %vm290_vm1, %v4251_v6 }
  0xee   : > { %6923 = vst [vmem:[#allocation8_spill] sm:$0xff] %v6110_v39  ;;  %5017 = vmatprep.mubr.msk.f32.mxu1 %vm290_vm1, %v6105_v11  ;;  %v6123_v50 = vpop.f32.mrf.mxu0 }
  0xef   : > { %v6125_v14 = vpop.f32.mrf.mxu1 }
  0xf0   : > { %6926 = vst [vmem:[#allocation10_spill] sm:$0xff] %v6125_v14  ;;  %v6127_v40 = vpop.f32.mrf.mxu0  ;;  %5068 = vmatmul.mubr.msk.f32.gmra.mxu0 %vm290_vm1, %v4252_v4 }
  0xf1   : > { %v6129_v39 = vpop.f32.mrf.mxu1  ;;  %5018 = vmatmul.mubr.msk.f32.gmra.mxu1 %vm290_vm1, %v6120_v46  ;;  %5122 = vmatprep.mubr.msk.f32.mxu0 %vm290_vm1, %v6892_v16 }
  0xf2   : > { %6927 = vst [vmem:[#allocation11_spill] sm:$0xff] %v6129_v39  ;;  %5072 = vmatprep.mubr.msk.f32.mxu1 %vm290_vm1, %v5325_v13  ;;  %v6138_v6 = vpop.f32.mrf.mxu0 }
  0xf3   : > { %v6140_v8 = vpop.f32.mrf.mxu1 }
  0xf4   : > { %6928 = vst [vmem:[#allocation12_spill] sm:$0xff] %v6140_v8  ;;  %v4824_v14 = vpop.f32.mrf.mxu0  ;;  %5123 = vmatmul.mubr.msk.f32.vlgmr.msra.gmra.mxu0 %vm290_vm1, %v6893_v18 }
  0xf5   : > { %v4774_v37 = vpop.f32.mrf.mxu1  ;;  %5073 = vmatmul.mubr.msk.f32.vlgmr.msra.gmra.mxu1 %vm290_vm1, %v5343_v15  ;;  %5125 = vmatprep.mubr.msk.f32.mxu0 %vm290_vm1, %v6894_v20 }
  0xf6   : > { %v787_v4 = vadd.f32 %v4774_v37, %v6008_v41  ;;  %5075 = vmatprep.mubr.msk.f32.mxu1 %vm290_vm1, %v5349_v17  ;;  %v1139_v16 = vpop.f32.mrf.mxu0  ;;  %v4297_v37 = vld [vmem:[%s5280_s25 + $0xa9] sm:$0xff] }
  0xf7   : > { %v781_v13 = vpop.f32.mrf.mxu1 }
  0xf8   : > { %v6151_v39 = vadd.f32 %v4824_v14, %v787_v4  ;;  %v782_v8 = vadd.f32 %v781_v13, %v6020_v47  ;;  %v4827_v11 = vpop.f32.mrf.mxu0  ;;  %5126 = vmatmul.mubr.msk.f32.gmra.mxu0 %vm290_vm1, %v6895_v22 }
  0xf9   : > { %v4777_v46 = vpop.f32.mrf.mxu1  ;;  %5076 = vmatmul.mubr.msk.f32.gmra.mxu1 %vm290_vm1, %v5363_v19  ;;  %5128 = vmatprep.mubr.msk.f32.mxu0 %vm290_vm1, %v6896_v24 }
  0xfa   : > { %v6158_v15 = vadd.f32 %v1139_v16, %v782_v8  ;;  %v797_v17 = vadd.f32 %v4777_v46, %v6024_v51  ;;  %5078 = vmatprep.mubr.msk.f32.mxu1 %vm290_vm1, %v5369_v21  ;;  %v1149_v20 = vpop.f32.mrf.mxu0  ;;  %v4295_v51 = vld [vmem:[%s5280_s25 + $0x91] sm:$0xff] }
  0xfb   : > { %v791_v18 = vpop.f32.mrf.mxu1  ;;  %v4298_v16 = vld [vmem:[%s5280_s25 + $0xb1] sm:$0xff] }
  0xfc   : > { %v6165_v41 = vadd.f32 %v4827_v11, %v797_v17  ;;  %v792_v19 = vadd.f32 %v791_v18, %v6036_v59  ;;  %v4830_v14 = vpop.f32.mrf.mxu0  ;;  %5129 = vmatmul.mubr.msk.f32.gmra.mxu0 %vm290_vm1, %v6897_v26  ;;  %v4299_v18 = vld [vmem:[%s5280_s25 + $0xc1] sm:$0xff] }
  0xfd   : > { %v4780_v47 = vpop.f32.mrf.mxu1  ;;  %5079 = vmatmul.mubr.msk.f32.gmra.mxu1 %vm290_vm1, %v5383_v23  ;;  %5131 = vmatprep.mubr.msk.f32.mxu0 %vm290_vm1, %v6898_v28 }
  0xfe   : > { %v6172_v22 = vadd.f32 %v1149_v20, %v792_v19  ;;  %v807_v21 = vadd.f32 %v4780_v47, %v6040_v61  ;;  %5081 = vmatprep.mubr.msk.f32.mxu1 %vm290_vm1, %v5389_v25  ;;  %v1159_v24 = vpop.f32.mrf.mxu0  ;;  %v4296_v61 = vld [vmem:[%s5280_s25 + $0x99] sm:$0xff] }
  0xff   : > { %v801_v11 = vpop.f32.mrf.mxu1 }
 0x100   : > { %v6180_v59 = vadd.f32 %v4830_v14, %v807_v21  ;;  %v802_v23 = vadd.f32 %v801_v11, %v6052_v56  ;;  %v4833_v46 = vpop.f32.mrf.mxu0  ;;  %5132 = vmatmul.mubr.msk.f32.gmra.mxu0 %vm290_vm1, %v6899_v29  ;;  %v4300_v14 = vld [vmem:[%s5280_s25 + $0xc9] sm:$0xff]  ;;  %v4301_v11 = vld [vmem:[%s5280_s25 + $0xd9] sm:$0xff] }
 0x101   : > { %v4783_v26 = vpop.f32.mrf.mxu1  ;;  %5082 = vmatmul.mubr.msk.f32.gmra.mxu1 %vm290_vm1, %v5403_v27  ;;  %5134 = vmatprep.mubr.msk.f32.mxu0 %vm290_vm1, %v6900_v30 }
 0x102   : > { %v6187_v25 = vadd.f32 %v1159_v24, %v802_v23  ;;  %v817_v28 = vadd.f32 %v4783_v26, %v6056_v2  ;;  %5084 = vmatprep.mubr.msk.f32.mxu1 %vm290_vm1, %v4295_v51  ;;  %v1169_v8 = vpop.f32.mrf.mxu0  ;;  %v4302_v26 = vld [vmem:[%s5280_s25 + $0xe1] sm:$0xff] }
 0x103   : > { %v811_v56 = vpop.f32.mrf.mxu1 }
 0x104   : > { %v6195_v4 = vadd.f32 %v4833_v46, %v817_v28  ;;  %v812_v27 = vadd.f32 %v811_v56, %v6068_v52  ;;  %v4836_v13 = vpop.f32.mrf.mxu0  ;;  %5135 = vmatmul.mubr.msk.f32.gmra.mxu0 %vm290_vm1, %v6901_v31  ;;  %v4303_v28 = vld [vmem:[%s5280_s25 + $0xf1] sm:$0xff] }
 0x105   : > { %v4786_v29 = vpop.f32.mrf.mxu1  ;;  %5085 = vmatmul.mubr.msk.f32.gmra.mxu1 %vm290_vm1, %v4296_v61  ;;  %5137 = vmatprep.mubr.msk.f32.mxu0 %vm290_vm1, %v6902_v32 }
 0x106   : > { %v6201_v2 = vadd.f32 %v1169_v8, %v812_v27  ;;  %v827_v30 = vadd.f32 %v4786_v29, %v6072_v10  ;;  %5087 = vmatprep.mubr.msk.f32.mxu1 %vm290_vm1, %v4297_v37  ;;  %v1179_v52 = vpop.f32.mrf.mxu0  ;;  %v4304_v37 = vld [vmem:[%s5280_s25 + $0xf9] sm:$0xff]  ;;  %v4305_v29 = vld [vmem:[%s5280_s25 + $0x109] sm:$0xff] }
 0x107   : > { %v821_v17 = vpop.f32.mrf.mxu1 }
 0x108   : > { %v6209_v20 = vadd.f32 %v4836_v13, %v827_v30  ;;  %v822_v19 = vadd.f32 %v821_v17, %v6084_v48  ;;  %v4839_v47 = vpop.f32.mrf.mxu0  ;;  %5138 = vmatmul.mubr.msk.f32.gmra.mxu0 %vm290_vm1, %v6903_v33  ;;  %v4306_v17 = vld [vmem:[%s5280_s25 + $0x111] sm:$0xff] }
 0x109   : > { %v4789_v31 = vpop.f32.mrf.mxu1  ;;  %5088 = vmatmul.mubr.msk.f32.gmra.mxu1 %vm290_vm1, %v4298_v16  ;;  %5140 = vmatprep.mubr.msk.f32.mxu0 %vm290_vm1, %v6904_v34 }
 0x10a   : > { %v6215_v10 = vadd.f32 %v1179_v52, %v822_v19  ;;  %v837_v32 = vadd.f32 %v4789_v31, %v6088_v7  ;;  %5090 = vmatprep.mubr.msk.f32.mxu1 %vm290_vm1, %v4299_v18  ;;  %v1189_v48 = vpop.f32.mrf.mxu0  ;;  %v4307_v18 = vld [vmem:[%s5280_s25 + $0x121] sm:$0xff] }
 0x10b   : > { %v831_v21 = vpop.f32.mrf.mxu1 }
 0x10c   : > { %v6223_v24 = vadd.f32 %v4839_v47, %v837_v32  ;;  %v832_v51 = vadd.f32 %v831_v21, %v6100_v42  ;;  %v4842_v23 = vpop.f32.mrf.mxu0  ;;  %5141 = vmatmul.mubr.msk.f32.gmra.mxu0 %vm290_vm1, %v6905_v35  ;;  %v4308_v32 = vld [vmem:[%s5280_s25 + $0x129] sm:$0xff]  ;;  %v4309_v21 = vld [vmem:[%s5280_s25 + $0x139] sm:$0xff] }
 0x10d   : > { %v4792_v33 = vpop.f32.mrf.mxu1  ;;  %5091 = vmatmul.mubr.msk.f32.gmra.mxu1 %vm290_vm1, %v4300_v14  ;;  %5143 = vmatprep.mubr.msk.f32.mxu0 %vm290_vm1, %v6906_v36 }
 0x10e   : > { %v6229_v7 = vadd.f32 %v1189_v48, %v832_v51  ;;  %v847_v34 = vadd.f32 %v4792_v33, %v6108_v12  ;;  %5093 = vmatprep.mubr.msk.f32.mxu1 %vm290_vm1, %v4301_v11  ;;  %v1199_v42 = vpop.f32.mrf.mxu0  ;;  %v4310_v33 = vld [vmem:[%s5280_s25 + $0x141] sm:$0xff] }
 0x10f   : > { %v841_v46 = vpop.f32.mrf.mxu1 }
 0x110   : > { %v6237_v61 = vadd.f32 %v4842_v23, %v847_v34  ;;  %v842_v56 = vadd.f32 %v841_v46, %v6123_v50  ;;  %v4845_v8 = vpop.f32.mrf.mxu0  ;;  %5144 = vmatmul.mubr.msk.f32.gmra.mxu0 %vm290_vm1, %v6907_v44  ;;  %v4311_v34 = vld [vmem:[%s5280_s25 + $0x151] sm:$0xff] }
 0x111   : > { %v4795_v35 = vpop.f32.mrf.mxu1  ;;  %5094 = vmatmul.mubr.msk.f32.gmra.mxu1 %vm290_vm1, %v4302_v26  ;;  %5146 = vmatprep.mubr.msk.f32.mxu0 %vm290_vm1, %v6908_v45 }
 0x112   : > { %v6243_v12 = vadd.f32 %v1199_v42, %v842_v56  ;;  %v857_v36 = vadd.f32 %v4795_v35, %v6127_v40  ;;  %5096 = vmatprep.mubr.msk.f32.mxu1 %vm290_vm1, %v4303_v28  ;;  %v1209_v50 = vpop.f32.mrf.mxu0  ;;  %v4312_v28 = vld [vmem:[%s5280_s25 + $0x159] sm:$0xff]  ;;  %v4313_v35 = vld [vmem:[%s5280_s25 + $0x169] sm:$0xff] }
 0x113   : > { %v851_v27 = vpop.f32.mrf.mxu1 }
 0x114   : > { %v6251_v13 = vadd.f32 %v4845_v8, %v857_v36  ;;  %v852_v30 = vadd.f32 %v851_v27, %v6138_v6  ;;  %v4848_v16 = vpop.f32.mrf.mxu0  ;;  %5147 = vmatmul.mubr.msk.f32.gmra.mxu0 %vm290_vm1, %v6909_v55  ;;  %v4379_v8 = vld [vmem:[%s5280_s25 + $0x16a] sm:$0xff] }
 0x115   : > { %v4798_v44 = vpop.f32.mrf.mxu1  ;;  %5097 = vmatmul.mubr.msk.f32.gmra.mxu1 %vm290_vm1, %v4304_v37  ;;  %5149 = vmatprep.mubr.msk.f32.mxu0 %vm290_vm1, %v6910_v57 }
 0x116   : > { %v6257_v40 = vadd.f32 %v1209_v50, %v852_v30  ;;  %v867_v45 = vadd.f32 %v4798_v44, %v6010_v43  ;;  %5099 = vmatprep.mubr.msk.f32.mxu1 %vm290_vm1, %v4305_v29  ;;  %v1219_v6 = vpop.f32.mrf.mxu0  ;;  %v4314_v30 = vld [vmem:[%s5280_s25 + $0x171] sm:$0xff] }
 0x117   : > { %v861_v52 = vpop.f32.mrf.mxu1  ;;  %v4380_v44 = vld [vmem:[%s5280_s25 + $0x172] sm:$0xff] }
 0x118   : > { %v6265_v19 = vadd.f32 %v4848_v16, %v867_v45  ;;  %v862_v31 = vadd.f32 %v861_v52, %v6022_v49  ;;  %v4851_v47 = vpop.f32.mrf.mxu0  ;;  %5150 = vmatmul.mubr.msk.f32.gmra.mxu0 %vm290_vm1, %v6911_v0 }
 0x119   : > { %v4801_v55 = vpop.f32.mrf.mxu1  ;;  %5100 = vmatmul.mubr.msk.f32.gmra.mxu1 %vm290_vm1, %v4306_v17  ;;  %5152 = vmatprep.mubr.msk.f32.mxu0 %vm290_vm1, %v6912_v62  ;;  %v6931_v17 = vld [vmem:[#allocation4_spill] sm:$0xff] }
 0x11a   : > { %v6271_v43 = vadd.f32 %v1219_v6, %v862_v31  ;;  %v877_v57 = vadd.f32 %v4801_v55, %v6026_v53  ;;  %5102 = vmatprep.mubr.msk.f32.mxu1 %vm290_vm1, %v4307_v18  ;;  %v1229_v49 = vpop.f32.mrf.mxu0  ;;  %v6932_v55 = vld [vmem:[#allocation5_spill] sm:$0xff] }
 0x11b   : > { %v871_v14 = vpop.f32.mrf.mxu1 }
 0x11c   : > { %v6279_v48 = vadd.f32 %v4851_v47, %v877_v57  ;;  %v872_v11 = vadd.f32 %v871_v14, %v6038_v60  ;;  %v4854_v51 = vpop.f32.mrf.mxu0  ;;  %5153 = vmatmul.mubr.msk.f32.gmra.mxu0 %vm290_vm1, %v6913_v5  ;;  %v6933_v57 = vld [vmem:[#allocation33_spill] sm:$0xff] }
 0x11d   : > { %v4804_v0 = vpop.f32.mrf.mxu1  ;;  %5103 = vmatmul.mubr.msk.f32.gmra.mxu1 %vm290_vm1, %v4308_v32  ;;  %5155 = vmatprep.mubr.msk.f32.mxu0 %vm290_vm1, %v6914_v58  ;;  %v6934_v32 = vld [vmem:[#allocation7_spill] sm:$0xff] }
 0x11e   : > { %v6285_v53 = vadd.f32 %v1229_v49, %v872_v11  ;;  %v887_v62 = vadd.f32 %v4804_v0, %v6042_v63  ;;  %5105 = vmatprep.mubr.msk.f32.mxu1 %vm290_vm1, %v4309_v21  ;;  %v1239_v60 = vpop.f32.mrf.mxu0  ;;  %v4317_v21 = vld [vmem:[%s5280_s25 + $0x199] sm:$0xff] }
 0x11f   : > { %v881_v23 = vpop.f32.mrf.mxu1  ;;  %v4383_v11 = vld [vmem:[%s5280_s25 + $0x19a] sm:$0xff] }
 0x120   : > { %v6293_v26 = vadd.f32 %v4854_v51, %v887_v62  ;;  %v882_v5 = vadd.f32 %v881_v23, %v6054_v1  ;;  %v4857_v42 = vpop.f32.mrf.mxu0  ;;  %5156 = vmatmul.mubr.msk.f32.gmra.mxu0 %vm290_vm1, %v6916_v38  ;;  %v6935_v51 = vld [vmem:[#allocation6_spill] sm:$0xff] }
 0x121   : > { %v4807_v46 = vpop.f32.mrf.mxu1  ;;  %5106 = vmatmul.mubr.msk.f32.gmra.mxu1 %vm290_vm1, %v4310_v33  ;;  %5158 = vmatprep.mubr.msk.f32.mxu0 %vm290_vm1, %v6917_v54  ;;  %v6930_v54 = vld [vmem:[#allocation3_spill] sm:$0xff] }
 0x122   : > { %v6299_v63 = vadd.f32 %v1239_v60, %v882_v5  ;;  %v897_v58 = vadd.f32 %v4807_v46, %v6058_v3  ;;  %5108 = vmatprep.mubr.msk.f32.mxu1 %vm290_vm1, %v4311_v34  ;;  %v1249_v56 = vpop.f32.mrf.mxu0  ;;  %v6929_v3 = vld [vmem:[#allocation30_spill] sm:$0xff]  ;;  %v6937_v34 = vld [vmem:[#allocation9_spill] sm:$0xff]  ;;  %v6938_v46 = vld [vmem:[#allocation8_spill] sm:$0xff] }
 0x123   : > { %v891_v1 = vpop.f32.mrf.mxu1  ;;  %v6936_v60 = vld [vmem:[#allocation2_spill] sm:$0xff] }
 0x124   : > { %v6308_v36 = vadd.f32 %v4857_v42, %v897_v58  ;;  %v892_v38 = vadd.f32 %v891_v1, %v6070_v9  ;;  %v4860_v27 = vpop.f32.mrf.mxu0  ;;  %5159 = vmatmul.mubr.msk.f32.gmra.mxu0 %vm290_vm1, %v6929_v3  ;;  %v4318_v58 = vld [vmem:[%s5280_s25 + $0x1a1] sm:$0xff] }
 0x125   : > { %v4810_v37 = vpop.f32.mrf.mxu1  ;;  %5109 = vmatmul.mubr.msk.f32.gmra.mxu1 %vm290_vm1, %v4312_v28  ;;  %5161 = vmatprep.mubr.msk.f32.mxu0 %vm290_vm1, %v4379_v8  ;;  %v4384_v28 = vld [vmem:[%s5280_s25 + $0x1a2] sm:$0xff] }
 0x126   : > { %v6314_v50 = vadd.f32 %v1249_v56, %v892_v38  ;;  %v907_v29 = vadd.f32 %v4810_v37, %v6930_v54  ;;  %5111 = vmatprep.mubr.msk.f32.mxu1 %vm290_vm1, %v4313_v35  ;;  %v1259_v16 = vpop.f32.mrf.mxu0  ;;  %v6939_v8 = vld [vmem:[#allocation10_spill] sm:$0xff]  ;;  %v6940_v54 = vld [vmem:[#allocation11_spill] sm:$0xff] }
 0x127   : > { %v901_v9 = vpop.f32.mrf.mxu1 }
 0x128   : > { %v6321_v45 = vadd.f32 %v4860_v27, %v907_v29  ;;  %v902_v52 = vadd.f32 %v901_v9, %v6931_v17  ;;  %v4863_v18 = vpop.f32.mrf.mxu0  ;;  %5162 = vmatmul.mubr.msk.f32.gmra.mxu0 %vm290_vm1, %v4380_v44 }
 0x129   : > { %v4813_v6 = vpop.f32.mrf.mxu1  ;;  %5112 = vmatmul.mubr.msk.f32.gmra.mxu1 %vm290_vm1, %v4314_v30  ;;  %5164 = vmatprep.mubr.msk.f32.mxu0 %vm290_vm1, %v6934_v32 }
 0x12a   : > { %v6326_v31 = vadd.f32 %v1259_v16, %v902_v52  ;;  %v917_v47 = vadd.f32 %v4813_v6, %v6932_v55  ;;  %5114 = vmatprep.mubr.msk.f32.mxu1 %vm290_vm1, %v6933_v57  ;;  %v1269_v49 = vpop.f32.mrf.mxu0  ;;  %v6941_v16 = vld [vmem:[#allocation12_spill] sm:$0xff] }
 0x12b   : > { %v911_v14 = vpop.f32.mrf.mxu1 }
 0x12c   : > { %v6335_v0 = vadd.f32 %v4863_v18, %v917_v47  ;;  %v912_v62 = vadd.f32 %v911_v14, %v6935_v51  ;;  %v4866_v23 = vpop.f32.mrf.mxu0  ;;  %5165 = vmatmul.mubr.msk.f32.gmra.mxu0 %vm290_vm1, %v6937_v34 }
 0x12d   : > { %v4816_v33 = vpop.f32.mrf.mxu1  ;;  %5115 = vmatmul.mubr.msk.f32.gmra.mxu1 %vm290_vm1, %v6936_v60  ;;  %5167 = vmatprep.mubr.msk.f32.mxu0 %vm290_vm1, %v4383_v11 }
 0x12e   : > { %v6342_v5 = vadd.f32 %v1269_v49, %v912_v62  ;;  %v927_v42 = vadd.f32 %v4816_v33, %v6938_v46  ;;  %5117 = vmatprep.mubr.msk.f32.mxu1 %vm290_vm1, %v4317_v21  ;;  %v1279_v56 = vpop.f32.mrf.mxu0 }
 0x12f   : > { %v921_v1 = vpop.f32.mrf.mxu1 }
 0x130   : > { %v6349_v35 = vadd.f32 %v4866_v23, %v927_v42  ;;  %v922_v38 = vadd.f32 %v921_v1, %v6939_v8  ;;  %v4869_v27 = vpop.f32.mrf.mxu0  ;;  %5168 = vmatmul.mubr.msk.f32.gmra.mxu0 %vm290_vm1, %v4384_v28 }
 0x131   : > { %v4819_v37 = vpop.f32.mrf.mxu1  ;;  %5118 = vmatmul.mubr.msk.f32.gmra.mxu1 %vm290_vm1, %v4318_v58 }
 0x132   : > { %v6354_v3 = vadd.f32 %v1279_v56, %v922_v38  ;;  %v937_v29 = vadd.f32 %v4819_v37, %v6940_v54  ;;  %v1289_v44 = vpop.f32.mrf.mxu0 }
 0x133   : > { %v931_v30 = vpop.f32.mrf.mxu1 }
 0x134   : > { %v6357_v9 = vadd.f32 %v4869_v27, %v937_v29  ;;  %v932_v17 = vadd.f32 %v931_v30, %v6941_v16  ;;  %v4924_v6 = vpop.f32.mrf.mxu0 }
 0x135   : > { %v4874_v52 = vpop.f32.mrf.mxu1 }
 0x136   : > { %v6360_v18 = vadd.f32 %v1289_v44, %v932_v17  ;;  %v1690_v55 = vadd.f32 %v4874_v52, %v6151_v39  ;;  %v1920_v57 = vpop.f32.mrf.mxu0 }
 0x137   : > { %v1530_v47 = vpop.f32.mrf.mxu1 }
 0x138   : > { %v6363_v32 = vadd.f32 %v4924_v6, %v1690_v55  ;;  %v1689_v14 = vadd.f32 %v1530_v47, %v6158_v15  ;;  %v4927_v21 = vpop.f32.mrf.mxu0 }
 0x139   : > { %v4877_v49 = vpop.f32.mrf.mxu1 }
 0x13a   : > { %v6366_v11 = vadd.f32 %v1920_v57, %v1689_v14  ;;  %v1692_v51 = vadd.f32 %v4877_v49, %v6165_v41  ;;  %v1930_v33 = vpop.f32.mrf.mxu0 }
 0x13b   : > { %v1540_v62 = vpop.f32.mrf.mxu1 }
 0x13c   : > { %v6369_v23 = vadd.f32 %v4927_v21, %v1692_v51  ;;  %v1691_v60 = vadd.f32 %v1540_v62, %v6172_v22  ;;  %v4930_v39 = vpop.f32.mrf.mxu0 }
 0x13d   : > { %v4880_v34 = vpop.f32.mrf.mxu1 }
 0x13e   : > { %v6372_v46 = vadd.f32 %v1930_v33, %v1691_v60  ;;  %v1694_v42 = vadd.f32 %v4880_v34, %v6180_v59  ;;  %v1940_v15 = vpop.f32.mrf.mxu0 }
 0x13f   : > { %v1550_v58 = vpop.f32.mrf.mxu1 }
 0x140   : > { %v6375_v28 = vadd.f32 %v4930_v39, %v1694_v42  ;;  %v1693_v1 = vadd.f32 %v1550_v58, %v6187_v25  ;;  %v4933_v41 = vpop.f32.mrf.mxu0 }
 0x141   : > { %v4883_v56 = vpop.f32.mrf.mxu1 }
 0x142   : > { %v6378_v8 = vadd.f32 %v1940_v15, %v1693_v1  ;;  %v1696_v38 = vadd.f32 %v4883_v56, %v6195_v4  ;;  %v1950_v22 = vpop.f32.mrf.mxu0 }
 0x143   : > { %v1560_v37 = vpop.f32.mrf.mxu1 }
 0x144   : > { %v6381_v27 = vadd.f32 %v4933_v41, %v1696_v38  ;;  %v1695_v54 = vadd.f32 %v1560_v37, %v6201_v2  ;;  %v4936_v59 = vpop.f32.mrf.mxu0 }
 0x145   : > { %v4886_v29 = vpop.f32.mrf.mxu1 }
 0x146   : > { %v6384_v30 = vadd.f32 %v1950_v22, %v1695_v54  ;;  %v1698_v44 = vadd.f32 %v4886_v29, %v6209_v20  ;;  %v1960_v25 = vpop.f32.mrf.mxu0 }
 0x147   : > { %v1570_v16 = vpop.f32.mrf.mxu1 }
 0x148   : > { %v6387_v17 = vadd.f32 %v4936_v59, %v1698_v44  ;;  %v1697_v52 = vadd.f32 %v1570_v16, %v6215_v10  ;;  %v4939_v4 = vpop.f32.mrf.mxu0 }
 0x149   : > { %v4889_v6 = vpop.f32.mrf.mxu1 }
 0x14a   : > { %v6390_v55 = vadd.f32 %v1960_v25, %v1697_v52  ;;  %v1700_v47 = vadd.f32 %v4889_v6, %v6223_v24  ;;  %v1970_v2 = vpop.f32.mrf.mxu0 }
 0x14b   : > { %v1580_v57 = vpop.f32.mrf.mxu1 }
 0x14c   : > { %v6393_v14 = vadd.f32 %v4939_v4, %v1700_v47  ;;  %v1699_v49 = vadd.f32 %v1580_v57, %v6229_v7  ;;  %v4942_v20 = vpop.f32.mrf.mxu0 }
 0x14d   : > { %v4892_v21 = vpop.f32.mrf.mxu1 }
 0x14e   : > { %v6396_v51 = vadd.f32 %v1970_v2, %v1699_v49  ;;  %v1702_v62 = vadd.f32 %v4892_v21, %v6237_v61  ;;  %v1980_v10 = vpop.f32.mrf.mxu0 }
 0x14f   : > { %v1590_v33 = vpop.f32.mrf.mxu1 }
 0x150   : > { %v6399_v60 = vadd.f32 %v4942_v20, %v1702_v62  ;;  %v1701_v34 = vadd.f32 %v1590_v33, %v6243_v12  ;;  %v4945_v24 = vpop.f32.mrf.mxu0 }
 0x151   : > { %v4895_v39 = vpop.f32.mrf.mxu1 }
 0x152   : > { %v6402_v42 = vadd.f32 %v1980_v10, %v1701_v34  ;;  %v1704_v58 = vadd.f32 %v4895_v39, %v6251_v13  ;;  %v1990_v7 = vpop.f32.mrf.mxu0 }
 0x153   : > { %v1600_v15 = vpop.f32.mrf.mxu1 }
 0x154   : > { %v6405_v1 = vadd.f32 %v4945_v24, %v1704_v58  ;;  %v1703_v56 = vadd.f32 %v1600_v15, %v6257_v40  ;;  %v4948_v61 = vpop.f32.mrf.mxu0 }
 0x155   : > { %v4898_v41 = vpop.f32.mrf.mxu1 }
 0x156   : > { %v6408_v38 = vadd.f32 %v1990_v7, %v1703_v56  ;;  %v1706_v37 = vadd.f32 %v4898_v41, %v6265_v19  ;;  %v2000_v12 = vpop.f32.mrf.mxu0 }
 0x157   : > { %v1610_v22 = vpop.f32.mrf.mxu1 }
 0x158   : > { %v6411_v54 = vadd.f32 %v4948_v61, %v1706_v37  ;;  %v1705_v29 = vadd.f32 %v1610_v22, %v6271_v43  ;;  %v4951_v13 = vpop.f32.mrf.mxu0 }
 0x159   : > { %v4901_v59 = vpop.f32.mrf.mxu1 }
 0x15a   : > { %v6414_v44 = vadd.f32 %v2000_v12, %v1705_v29  ;;  %v1708_v16 = vadd.f32 %v4901_v59, %v6279_v48  ;;  %v2010_v40 = vpop.f32.mrf.mxu0 }
 0x15b   : > { %v1620_v25 = vpop.f32.mrf.mxu1 }
 0x15c   : > { %v6417_v52 = vadd.f32 %v4951_v13, %v1708_v16  ;;  %v1707_v6 = vadd.f32 %v1620_v25, %v6285_v53  ;;  %v4954_v19 = vpop.f32.mrf.mxu0 }
 0x15d   : > { %v4904_v4 = vpop.f32.mrf.mxu1 }
 0x15e   : > { %6942 = vst [vmem:[#allocation13_spill] sm:$0xff] %v6417_v52  ;;  %v6420_v47 = vadd.f32 %v2010_v40, %v1707_v6  ;;  %v1710_v57 = vadd.f32 %v4904_v4, %v6293_v26  ;;  %v2020_v43 = vpop.f32.mrf.mxu0 }
 0x15f   : > { %v1630_v2 = vpop.f32.mrf.mxu1 }
 0x160   : > { %6943 = vst [vmem:[#allocation14_spill] sm:$0xff] %v6420_v47  ;;  %v6423_v49 = vadd.f32 %v4954_v19, %v1710_v57  ;;  %v1709_v21 = vadd.f32 %v1630_v2, %v6299_v63  ;;  %v4957_v48 = vpop.f32.mrf.mxu0 }
 0x161   : > { %v4907_v20 = vpop.f32.mrf.mxu1 }
 0x162   : > { %6944 = vst [vmem:[#allocation15_spill] sm:$0xff] %v6423_v49  ;;  %v6426_v62 = vadd.f32 %v2020_v43, %v1709_v21  ;;  %v1712_v33 = vadd.f32 %v4907_v20, %v6308_v36  ;;  %v2030_v53 = vpop.f32.mrf.mxu0 }
 0x163   : > { %v1640_v10 = vpop.f32.mrf.mxu1 }
 0x164   : > { %6945 = vst [vmem:[#allocation16_spill] sm:$0xff] %v6426_v62  ;;  %v6429_v34 = vadd.f32 %v4957_v48, %v1712_v33  ;;  %v1711_v39 = vadd.f32 %v1640_v10, %v6314_v50  ;;  %v4960_v26 = vpop.f32.mrf.mxu0 }
 0x165   : > { %v4910_v24 = vpop.f32.mrf.mxu1 }
 0x166   : > { %6946 = vst [vmem:[#allocation17_spill] sm:$0xff] %v6429_v34  ;;  %v6432_v58 = vadd.f32 %v2030_v53, %v1711_v39  ;;  %v1714_v15 = vadd.f32 %v4910_v24, %v6321_v45  ;;  %v2040_v63 = vpop.f32.mrf.mxu0 }
 0x167   : > { %v1650_v7 = vpop.f32.mrf.mxu1 }
 0x168   : > { %6947 = vst [vmem:[#allocation18_spill] sm:$0xff] %v6432_v58  ;;  %v6435_v56 = vadd.f32 %v4960_v26, %v1714_v15  ;;  %v1713_v41 = vadd.f32 %v1650_v7, %v6326_v31  ;;  %v4963_v36 = vpop.f32.mrf.mxu0 }
 0x169   : > { %v4913_v61 = vpop.f32.mrf.mxu1 }
 0x16a   : > { %6948 = vst [vmem:[#allocation19_spill] sm:$0xff] %v6435_v56  ;;  %v6438_v37 = vadd.f32 %v2040_v63, %v1713_v41  ;;  %v1716_v22 = vadd.f32 %v4913_v61, %v6335_v0  ;;  %v2050_v50 = vpop.f32.mrf.mxu0 }
 0x16b   : > { %v1660_v12 = vpop.f32.mrf.mxu1 }
 0x16c   : > { %6949 = vst [vmem:[#allocation20_spill] sm:$0xff] %v6438_v37  ;;  %v6441_v29 = vadd.f32 %v4963_v36, %v1716_v22  ;;  %v1715_v59 = vadd.f32 %v1660_v12, %v6342_v5  ;;  %v4966_v45 = vpop.f32.mrf.mxu0 }
 0x16d   : > { %v4916_v13 = vpop.f32.mrf.mxu1 }
 0x16e   : > { %6950 = vst [vmem:[#allocation21_spill] sm:$0xff] %v6441_v29  ;;  %v6444_v16 = vadd.f32 %v2050_v50, %v1715_v59  ;;  %v1718_v25 = vadd.f32 %v4916_v13, %v6349_v35  ;;  %v2060_v31 = vpop.f32.mrf.mxu0 }
 0x16f   : > { %v1670_v40 = vpop.f32.mrf.mxu1 }
 0x170   : > { %6951 = vst [vmem:[#allocation22_spill] sm:$0xff] %v6444_v16  ;;  %v6447_v6 = vadd.f32 %v4966_v45, %v1718_v25  ;;  %v1717_v4 = vadd.f32 %v1670_v40, %v6354_v3  ;;  %v4969_v0 = vpop.f32.mrf.mxu0 }
 0x171   : > { %v4919_v19 = vpop.f32.mrf.mxu1 }
 0x172   : > { %6952 = vst [vmem:[#allocation23_spill] sm:$0xff] %v6447_v6  ;;  %v6450_v57 = vadd.f32 %v2060_v31, %v1717_v4  ;;  %v1720_v2 = vadd.f32 %v4919_v19, %v6357_v9  ;;  %v2070_v5 = vpop.f32.mrf.mxu0 }
 0x173   : > { %v1680_v43 = vpop.f32.mrf.mxu1 }
 0x174   : > { %6953 = vst [vmem:[#allocation24_spill] sm:$0xff] %v6450_v57  ;;  %v6453_v21 = vadd.f32 %v4969_v0, %v1720_v2  ;;  %v1719_v20 = vadd.f32 %v1680_v43, %v6360_v18  ;;  %v6456_v35 = vpop.f32.mrf.mxu0 }
 0x175   : > { %v4974_v48 = vpop.f32.mrf.mxu1 }
 0x176   : > { %6954 = vst [vmem:[#allocation25_spill] sm:$0xff] %v6453_v21  ;;  %v6458_v33 = vadd.f32 %v2070_v5, %v1719_v20  ;;  %v6460_v53 = vpop.f32.mrf.mxu0 }
 0x177   : > { %v2310_v10 = vpop.f32.mrf.mxu1 }
 0x178   : > { %6955 = vst [vmem:[#allocation26_spill] sm:$0xff] %v6458_v33  ;;  %v6464_v39 = vpop.f32.mrf.mxu0 }
 0x179   : > { %v6462_v3 = vpop.f32.mrf.mxu1 }
 0x17a   : > { %v6468_v9 = vpop.f32.mrf.mxu0 }
 0x17b   : > { %v6466_v24 = vpop.f32.mrf.mxu1 }
 0x17c   : > { %v6472_v15 = vpop.f32.mrf.mxu0 }
 0x17d   : > { %v6470_v26 = vpop.f32.mrf.mxu1 }
 0x17e   : > { %v6476_v7 = vpop.f32.mrf.mxu0 }
 0x17f   : > { %v6474_v18 = vpop.f32.mrf.mxu1 }
 0x180   : > { %v6480_v41 = vpop.f32.mrf.mxu0 }
 0x181   : > { %v6478_v63 = vpop.f32.mrf.mxu1 }
 0x182   : > { %v6484_v36 = vpop.f32.mrf.mxu0 }
 0x183   : > { %v6482_v61 = vpop.f32.mrf.mxu1 }
 0x184   : > { %v6488_v12 = vpop.f32.mrf.mxu0 }
 0x185   : > { %v6486_v22 = vpop.f32.mrf.mxu1 }
 0x186   : > { %v6492_v59 = vpop.f32.mrf.mxu0 }
 0x187   : > { %v6490_v50 = vpop.f32.mrf.mxu1 }
 0x188   : > { %v6496_v45 = vpop.f32.mrf.mxu0 }
 0x189   : > { %v6494_v13 = vpop.f32.mrf.mxu1 }
 0x18a   : > { %v6500_v40 = vpop.f32.mrf.mxu0 }
 0x18b   : > { %v6498_v25 = vpop.f32.mrf.mxu1 }
 0x18c   : > { %v6504_v4 = vpop.f32.mrf.mxu0 }
 0x18d   : > { %v6502_v31 = vpop.f32.mrf.mxu1 }
 0x18e   : > { %v6508_v0 = vpop.f32.mrf.mxu0 }
 0x18f   : > { %v6506_v19 = vpop.f32.mrf.mxu1 }
 0x190   : > { %v6512_v43 = vpop.f32.mrf.mxu0 }
 0x191   : > { %v6510_v2 = vpop.f32.mrf.mxu1 }
 0x192   : > { %v6516_v20 = vpop.f32.mrf.mxu0 }
 0x193   : > { %v6514_v5 = vpop.f32.mrf.mxu1 }
 0x194   : > { %v6520_v21 = vpop.f32.mrf.mxu0 }
 0x195   : > { %v6518_v33 = vpop.f32.mrf.mxu1 }
 0x196   : > { %v6524_v6 = vpop.f32.mrf.mxu0 }
 0x197   : > { %v6522_v57 = vpop.f32.mrf.mxu1  ;;  %6956 = vst [vmem:[#allocation27_spill] sm:$0xff] %v6524_v6 }
 0x198   : > { %v6528_v29 = vpop.f32.mrf.mxu0 }
 0x199   : > { %v6526_v16 = vpop.f32.mrf.mxu1  ;;  %6958 = vst [vmem:[#allocation29_spill] sm:$0xff] %v6528_v29 }
 0x19a   : > { %6957 = vst [vmem:[#allocation28_spill] sm:$0xff] %v6526_v16  ;;  %v6532_v56 = vpop.f32.mrf.mxu0 }
 0x19b   : > { %v6530_v37 = vpop.f32.mrf.mxu1  ;;  %6960 = vst [vmem:[#allocation32_spill] sm:$0xff] %v6532_v56 }
 0x19c   : > { %6959 = vst [vmem:[#allocation31_spill] sm:$0xff] %v6530_v37  ;;  %v6536_v34 = vpop.f32.mrf.mxu0 }
 0x19d   : > { %v6534_v58 = vpop.f32.mrf.mxu1  ;;  %6962 = vst [vmem:[#allocation3_spill] sm:$0xff] %v6536_v34 }
 0x19e   : > { %6961 = vst [vmem:[#allocation30_spill] sm:$0xff] %v6534_v58  ;;  %v6540_v49 = vpop.f32.mrf.mxu0 }
 0x19f   : > { %v6538_v62 = vpop.f32.mrf.mxu1  ;;  %6964 = vst [vmem:[#allocation5_spill] sm:$0xff] %v6540_v49 }
 0x1a0   : > { %6963 = vst [vmem:[#allocation4_spill] sm:$0xff] %v6538_v62  ;;  %v6544_v52 = vpop.f32.mrf.mxu0 }
 0x1a1   : > { %v6542_v47 = vpop.f32.mrf.mxu1  ;;  %6966 = vst [vmem:[#allocation7_spill] sm:$0xff] %v6544_v52 }
 0x1a2   : > { %6965 = vst [vmem:[#allocation33_spill] sm:$0xff] %v6542_v47  ;;  %v6548_v16 = vpop.f32.mrf.mxu0 }
 0x1a3   : > { %v6546_v6 = vpop.f32.mrf.mxu1  ;;  %6968 = vst [vmem:[#allocation2_spill] sm:$0xff] %v6548_v16 }
 0x1a4   : > { %6967 = vst [vmem:[#allocation6_spill] sm:$0xff] %v6546_v6  ;;  %v6552_v37 = vpop.f32.mrf.mxu0 }
 0x1a5   : > { %v6550_v29 = vpop.f32.mrf.mxu1  ;;  %6970 = vst [vmem:[#allocation8_spill] sm:$0xff] %v6552_v37  ;;  %v2470_v37 = vadd.f32 %v4974_v48, %v6363_v32  ;;  %v2471_v48 = vadd.f32 %v6466_v24, %v6372_v46 }
 0x1a6   : > { %6969 = vst [vmem:[#allocation9_spill] sm:$0xff] %v6550_v29  ;;  %v6556_v58 = vpop.f32.mrf.mxu0 }
 0x1a7   : > { %v6554_v56 = vpop.f32.mrf.mxu1  ;;  %6972 = vst [vmem:[#allocation11_spill] sm:$0xff] %v6556_v58 }
 0x1a8   : > { %6971 = vst [vmem:[#allocation10_spill] sm:$0xff] %v6554_v56  ;;  %v6560_v62 = vpop.f32.mrf.mxu0 }
 0x1a9   : > { %v6558_v34 = vpop.f32.mrf.mxu1  ;;  %6974 = vst [vmem:[#allocation34_spill] sm:$0xff] %v6560_v62  ;;  %v2469_v62 = vadd.f32 %v2310_v10, %v6366_v11  ;;  %v6593_v11 = vld [vmem:[%s6794_s2] ss:$0 sm:$0xff] }
 0x1aa   : > { %6973 = vst [vmem:[#allocation12_spill] sm:$0xff] %v6558_v34  ;;  %v6564_v47 = vpop.f32.mrf.mxu0 }
 0x1ab   : > { %v6562_v49 = vpop.f32.mrf.mxu1  ;;  %6976 = vst [vmem:[#allocation36_spill] sm:$0xff] %v6564_v47  ;;  %v2861_v47 = vadd.f32 %v6456_v35, %v2470_v37  ;;  %v2860_v32 = vadd.f32 %v6460_v53, %v2469_v62  ;;  %v2473_v62 = vadd.f32 %v6474_v18, %v6378_v8 }
 0x1ac   : > { %6975 = vst [vmem:[#allocation35_spill] sm:$0xff] %v6562_v49  ;;  %v6568_v6 = vpop.f32.mrf.mxu0 }
 0x1ad   : > { %v6566_v52 = vpop.f32.mrf.mxu1  ;;  %6977 = vst [vmem:[#allocation37_spill] sm:$0xff] %v6568_v6  ;;  %v2472_v6 = vadd.f32 %v6462_v3, %v6369_v23  ;;  %v2474_v3 = vadd.f32 %v6470_v26, %v6375_v28  ;;  %v2864_v18 = vadd.f32 %v6476_v7, %v2473_v62 }
 0x1ae   : > { %v6572_v29 = vpop.f32.mrf.mxu0 }
 0x1af   : > { %v6570_v16 = vpop.f32.mrf.mxu1  ;;  %6979 = vst [vmem:[#allocation39_spill] sm:$0xff] %v6572_v29  ;;  %v2863_v37 = vadd.f32 %v6464_v39, %v2472_v6  ;;  %v2476_v6 = vadd.f32 %v6478_v63, %v6381_v27  ;;  %v2865_v8 = vadd.f32 %v6472_v15, %v2474_v3 }
 0x1b0   : > { %6978 = vst [vmem:[#allocation38_spill] sm:$0xff] %v6570_v16  ;;  %v6577_v58 = vpop.f32.mrf.mxu0 }
 0x1b1   : > { %v6575_v56 = vpop.f32.mrf.mxu1  ;;  %6980 = vst [vmem:[#allocation40_spill] sm:$0xff] %v6577_v58  ;;  %v2867_v7 = vadd.f32 %v6480_v41, %v2476_v6 }
 0x1b2   : > { %v6582_v49 = vpop.f32.mrf.mxu0 }
 0x1b3   : > { %v6580_v34 = vpop.f32.mrf.mxu1  ;;  %6982 = vst [vmem:[#allocation42_spill] sm:$0xff] %v6582_v49 }
 0x1b4   : > { %6981 = vst [vmem:[#allocation41_spill] sm:$0xff] %v6580_v34  ;;  %v5124_v29 = vpop.f32.mrf.mxu0 }
 0x1b5   : > { %v5074_v16 = vpop.f32.mrf.mxu1 }
 0x1b6   : > { %v3251_v58 = vadd.f32 %v5074_v16, %v2861_v47  ;;  %v3481_v49 = vpop.f32.mrf.mxu0  ;;  %v2862_v47 = vadd.f32 %v6468_v9, %v2471_v48  ;;  %v2475_v9 = vadd.f32 %v6482_v61, %v6384_v30  ;;  %v2478_v30 = vadd.f32 %v6486_v22, %v6387_v17 }
 0x1b7   : > { %v3091_v10 = vpop.f32.mrf.mxu1 }
 0x1b8   : > { %v3641_v35 = vadd.f32 %v5124_v29, %v3251_v58  ;;  %v3250_v23 = vadd.f32 %v3091_v10, %v2860_v32  ;;  %v5127_v46 = vpop.f32.mrf.mxu0  ;;  %v2869_v6 = vadd.f32 %v6488_v12, %v2478_v30  ;;  %v2479_v12 = vadd.f32 %v6498_v25, %v6396_v51 }
 0x1b9   : > { %v5077_v53 = vpop.f32.mrf.mxu1 }
 0x1ba   : > { %v3679_v16 = vadd.f32 %v6593_v11, %v3641_v35  ;;  %v3640_v24 = vadd.f32 %v3481_v49, %v3250_v23  ;;  %v3253_v34 = vadd.f32 %v5077_v53, %v2863_v37  ;;  %v3491_v29 = vpop.f32.mrf.mxu0  ;;  %v2866_v53 = vadd.f32 %v6484_v36, %v2475_v9 }
 0x1bb   : > { %v3101_v58 = vpop.f32.mrf.mxu1 }
 0x1bc   : > { %v3711_v39 = vmax.f32 %v3679_v16, 0.0  ;;  %v3678_v28 = vadd.f32 %v6593_v11, %v3640_v24  ;;  %v3643_v26 = vadd.f32 %v5127_v46, %v3253_v34  ;;  %v3252_v32 = vadd.f32 %v3101_v58, %v2862_v47  ;;  %v5130_v49 = vpop.f32.mrf.mxu0 }
 0x1bd   : > { %v5080_v27 = vpop.f32.mrf.mxu1  ;;  %v2477_v58 = vadd.f32 %v6490_v50, %v6390_v55 }
 0x1be   : > { %v3743_v63 = vmin.f32 %v3711_v39, 6.0  ;;  %v3710_v48 = vmax.f32 %v3678_v28, 0.0  ;;  %v3681_v34 = vadd.f32 %v6593_v11, %v3643_v26  ;;  %v3642_v15 = vadd.f32 %v3491_v29, %v3252_v32  ;;  %v3501_v37 = vpop.f32.mrf.mxu0 }
 0x1bf   : > { %v3255_v61 = vadd.f32 %v5080_v27, %v2865_v8  ;;  %v3111_v10 = vpop.f32.mrf.mxu1  ;;  %v2480_v29 = vadd.f32 %v6494_v13, %v6393_v14 }
 0x1c0   : > { %3776 = vst.msk [vmem:[%s6613_s19 + $0x8] sm:$0xff] %vm3774_vm2, %v3743_v63  ;;  %v3742_v35 = vmin.f32 %v3710_v48, 6.0  ;;  %v3713_v23 = vmax.f32 %v3681_v34, 0.0  ;;  %v3680_v3 = vadd.f32 %v6593_v11, %v3642_v15  ;;  %v3254_v62 = vadd.f32 %v3111_v10, %v2864_v18  ;;  %v5133_v16 = vpop.f32.mrf.mxu0 }
 0x1c1   : > { %v3645_v46 = vadd.f32 %v5130_v49, %v3255_v61  ;;  %v5083_v47 = vpop.f32.mrf.mxu1  ;;  %v2868_v63 = vadd.f32 %v6492_v59, %v2477_v58  ;;  %v2871_v48 = vadd.f32 %v6496_v45, %v2480_v29  ;;  %v2482_v34 = vadd.f32 %v6502_v31, %v6399_v60 }
 0x1c2   : > { %3775 = vst.msk [vmem:[%s6613_s19] sm:$0xff] %vm3774_vm2, %v3742_v35  ;;  %v3745_v41 = vmin.f32 %v3713_v23, 6.0  ;;  %v3712_v17 = vmax.f32 %v3680_v3, 0.0  ;;  %v3644_v22 = vadd.f32 %v3501_v37, %v3254_v62  ;;  %v3257_v24 = vadd.f32 %v5083_v47, %v2867_v7  ;;  %v3511_v28 = vpop.f32.mrf.mxu0 }
 0x1c3   : > { %v3683_v36 = vadd.f32 %v6593_v11, %v3645_v46  ;;  %v3121_v39 = vpop.f32.mrf.mxu1  ;;  %v2870_v37 = vadd.f32 %v6500_v40, %v2479_v12  ;;  %v2481_v59 = vadd.f32 %v6506_v19, %v6402_v42 }
 0x1c4   : > { %3778 = vst.msk [vmem:[%s6613_s19 + $0x18] sm:$0xff] %vm3774_vm2, %v3745_v41  ;;  %v3744_v26 = vmin.f32 %v3712_v17, 6.0  ;;  %v3682_v32 = vadd.f32 %v6593_v11, %v3644_v22  ;;  %v3647_v8 = vadd.f32 %v5133_v16, %v3257_v24  ;;  %v3256_v18 = vadd.f32 %v3121_v39, %v2866_v53  ;;  %v5136_v55 = vpop.f32.mrf.mxu0 }
 0x1c5   : > { %v3715_v9 = vmax.f32 %v3683_v36, 0.0  ;;  %v5086_v27 = vpop.f32.mrf.mxu1  ;;  %v2873_v53 = vadd.f32 %v6504_v4, %v2482_v34  ;;  %v2872_v17 = vadd.f32 %v6508_v0, %v2481_v59  ;;  %v2484_v22 = vadd.f32 %v6510_v2, %v6405_v1 }
 0x1c6   : > { %3777 = vst.msk [vmem:[%s6613_s19 + $0x10] sm:$0xff] %vm3774_vm2, %v3744_v26  ;;  %v3714_v14 = vmax.f32 %v3682_v32, 0.0  ;;  %v3685_v50 = vadd.f32 %v6593_v11, %v3647_v8  ;;  %v3646_v13 = vadd.f32 %v3511_v28, %v3256_v18  ;;  %v3259_v49 = vadd.f32 %v5086_v27, %v2869_v6  ;;  %v3521_v15 = vpop.f32.mrf.mxu0 }
 0x1c7   : > { %v3747_v51 = vmin.f32 %v3715_v9, 6.0  ;;  %v3131_v25 = vpop.f32.mrf.mxu1  ;;  %v2483_v24 = vadd.f32 %v6514_v5, %v6408_v38  ;;  %v2486_v0 = vadd.f32 %v6518_v33, %v6411_v54  ;;  %v2875_v18 = vadd.f32 %v6512_v43, %v2484_v22 }
 0x1c8   : > { %v3746_v7 = vmin.f32 %v3714_v14, 6.0  ;;  %v3717_v30 = vmax.f32 %v3685_v50, 0.0  ;;  %v3684_v61 = vadd.f32 %v6593_v11, %v3646_v13  ;;  %v3649_v10 = vadd.f32 %v5136_v55, %v3259_v49  ;;  %v5139_v23 = vpop.f32.mrf.mxu0 }
 0x1c9   : > { %3780 = vst.msk [vmem:[%s6613_s19 + $0x28] sm:$0xff] %vm3774_vm2, %v3747_v51  ;;  %v3258_v45 = vadd.f32 %v3131_v25, %v2868_v63  ;;  %v5089_v35 = vpop.f32.mrf.mxu1  ;;  %v2874_v12 = vadd.f32 %v6516_v20, %v2483_v24  ;;  %v2485_v9 = vadd.f32 %v6522_v57, %v6414_v44  ;;  %v2877_v49 = vadd.f32 %v6520_v21, %v2486_v0  ;;  %v6983_v63 = vld [vmem:[#allocation13_spill] sm:$0xff]  ;;  %v6991_v24 = vld [vmem:[#allocation16_spill] sm:$0xff] }
 0x1ca   : > { %3779 = vst.msk [vmem:[%s6613_s19 + $0x20] sm:$0xff] %vm3774_vm2, %v3746_v7  ;;  %v3749_v60 = vmin.f32 %v3717_v30, 6.0  ;;  %v3716_v31 = vmax.f32 %v3684_v61, 0.0  ;;  %v3687_v3 = vadd.f32 %v6593_v11, %v3649_v10  ;;  %v3261_v62 = vadd.f32 %v5089_v35, %v2871_v48  ;;  %v3531_v47 = vpop.f32.mrf.mxu0  ;;  %v6984_v48 = vld [vmem:[#allocation28_spill] sm:$0xff]  ;;  %v6985_v7 = vld [vmem:[#allocation27_spill] sm:$0xff] }
 0x1cb   : > { %v3648_v46 = vadd.f32 %v3521_v15, %v3258_v45  ;;  %v3141_v40 = vpop.f32.mrf.mxu1  ;;  %v2488_v43 = vadd.f32 %v6984_v48, %v6983_v63  ;;  %v2876_v30 = vadd.f32 %v6985_v7, %v2485_v9  ;;  %v6999_v63 = vld [vmem:[#allocation6_spill] sm:$0xff] }
 0x1cc   : > { %3782 = vst.msk [vmem:[%s6613_s19 + $0x38] sm:$0xff] %vm3774_vm2, %v3749_v60  ;;  %v3748_v42 = vmin.f32 %v3716_v31, 6.0  ;;  %v3719_v19 = vmax.f32 %v3687_v3, 0.0  ;;  %v3651_v16 = vadd.f32 %v5139_v23, %v3261_v62  ;;  %v3260_v41 = vadd.f32 %v3141_v40, %v2870_v37  ;;  %v5142_v58 = vpop.f32.mrf.mxu0  ;;  %v6986_v23 = vld [vmem:[#allocation29_spill] sm:$0xff]  ;;  %v6987_v31 = vld [vmem:[#allocation14_spill] sm:$0xff]  ;;  %v6988_v3 = vld [vmem:[#allocation31_spill] sm:$0xff] }
 0x1cd   : > { %v3686_v4 = vadd.f32 %v6593_v11, %v3648_v46  ;;  %v5092_v6 = vpop.f32.mrf.mxu1  ;;  %v2879_v60 = vadd.f32 %v6986_v23, %v2488_v43  ;;  %v2487_v62 = vadd.f32 %v6988_v3, %v6987_v31  ;;  %v6990_v46 = vld [vmem:[#allocation30_spill] sm:$0xff]  ;;  %v7003_v31 = vld [vmem:[#allocation9_spill] sm:$0xff] }
 0x1ce   : > { %3781 = vst.msk [vmem:[%s6613_s19 + $0x30] sm:$0xff] %vm3774_vm2, %v3748_v42  ;;  %v3751_v29 = vmin.f32 %v3719_v19, 6.0  ;;  %v3689_v36 = vadd.f32 %v6593_v11, %v3651_v16  ;;  %v3650_v39 = vadd.f32 %v3531_v47, %v3260_v41  ;;  %v3263_v28 = vadd.f32 %v5092_v6, %v2873_v53  ;;  %v3541_v1 = vpop.f32.mrf.mxu0  ;;  %v6989_v53 = vld [vmem:[#allocation15_spill] sm:$0xff] }
 0x1cf   : > { %v3718_v26 = vmax.f32 %v3686_v4, 0.0  ;;  %v3151_v32 = vpop.f32.mrf.mxu1  ;;  %v2490_v40 = vadd.f32 %v6990_v46, %v6989_v53  ;;  %v6992_v4 = vld [vmem:[#allocation4_spill] sm:$0xff]  ;;  %v7005_v53 = vld [vmem:[#allocation10_spill] sm:$0xff] }
 0x1d0   : > { %3784 = vst.msk [vmem:[%s6613_s19 + $0x48] sm:$0xff] %vm3774_vm2, %v3751_v29  ;;  %v3721_v38 = vmax.f32 %v3689_v36, 0.0  ;;  %v3688_v2 = vadd.f32 %v6593_v11, %v3650_v39  ;;  %v3653_v5 = vadd.f32 %v5142_v58, %v3263_v28  ;;  %v3262_v8 = vadd.f32 %v3151_v32, %v2872_v17  ;;  %v5145_v27 = vpop.f32.mrf.mxu0  ;;  %v6993_v32 = vld [vmem:[#allocation32_spill] sm:$0xff] }
 0x1d1   : > { %v3750_v54 = vmin.f32 %v3718_v26, 6.0  ;;  %v5095_v33 = vpop.f32.mrf.mxu1  ;;  %v2489_v6 = vadd.f32 %v6992_v4, %v6991_v24  ;;  %v7007_v24 = vld [vmem:[#allocation12_spill] sm:$0xff] }
 0x1d2   : > { %v3753_v55 = vmin.f32 %v3721_v38, 6.0  ;;  %v3720_v14 = vmax.f32 %v3688_v2, 0.0  ;;  %v3691_v50 = vadd.f32 %v6593_v11, %v3653_v5  ;;  %v3652_v13 = vadd.f32 %v3541_v1, %v3262_v8  ;;  %v3551_v51 = vpop.f32.mrf.mxu0  ;;  %v6994_v38 = vld [vmem:[#allocation3_spill] sm:$0xff]  ;;  %v6995_v5 = vld [vmem:[#allocation17_spill] sm:$0xff] }
 0x1d3   : > { %3783 = vst.msk [vmem:[%s6613_s19 + $0x40] sm:$0xff] %vm3774_vm2, %v3750_v54  ;;  %v3265_v20 = vadd.f32 %v5095_v33, %v2875_v18  ;;  %v3161_v34 = vpop.f32.mrf.mxu1  ;;  %v2878_v1 = vadd.f32 %v6993_v32, %v2487_v62  ;;  %v2881_v2 = vadd.f32 %v6994_v38, %v2490_v40  ;;  %v6996_v8 = vld [vmem:[#allocation33_spill] sm:$0xff]  ;;  %v7004_v62 = vld [vmem:[#allocation20_spill] sm:$0xff] }
 0x1d4   : > { %3786 = vst.msk [vmem:[%s6613_s19 + $0x58] sm:$0xff] %vm3774_vm2, %v3753_v55  ;;  %v3752_v44 = vmin.f32 %v3720_v14, 6.0  ;;  %v3723_v57 = vmax.f32 %v3691_v50, 0.0  ;;  %v3690_v25 = vadd.f32 %v6593_v11, %v3652_v13  ;;  %v3264_v15 = vadd.f32 %v3161_v34, %v2874_v12  ;;  %v5148_v10 = vpop.f32.mrf.mxu0  ;;  %v6997_v50 = vld [vmem:[#allocation5_spill] sm:$0xff] }
 0x1d5   : > { %v3655_v61 = vadd.f32 %v5145_v27, %v3265_v20  ;;  %v5098_v21 = vpop.f32.mrf.mxu1  ;;  %v2492_v18 = vadd.f32 %v6996_v8, %v6995_v5  ;;  %v2880_v13 = vadd.f32 %v6997_v50, %v2489_v6  ;;  %v2493_v46 = vadd.f32 %v7005_v53, %v7004_v62  ;;  %v7011_v5 = vld [vmem:[#allocation35_spill] sm:$0xff] }
 0x1d6   : > { %3785 = vst.msk [vmem:[%s6613_s19 + $0x50] sm:$0xff] %vm3774_vm2, %v3752_v44  ;;  %v3755_v37 = vmin.f32 %v3723_v57, 6.0  ;;  %v3722_v59 = vmax.f32 %v3690_v25, 0.0  ;;  %v3654_v45 = vadd.f32 %v3551_v51, %v3264_v15  ;;  %v3267_v35 = vadd.f32 %v5098_v21, %v2877_v49  ;;  %v3561_v19 = vpop.f32.mrf.mxu0  ;;  %v6998_v49 = vld [vmem:[#allocation18_spill] sm:$0xff]  ;;  %v7000_v15 = vld [vmem:[#allocation7_spill] sm:$0xff] }
 0x1d7   : > { %v3693_v47 = vadd.f32 %v6593_v11, %v3655_v61  ;;  %v3171_v42 = vpop.f32.mrf.mxu1  ;;  %v2491_v48 = vadd.f32 %v6999_v63, %v6998_v49  ;;  %v2883_v7 = vadd.f32 %v7000_v15, %v2492_v18 }
 0x1d8   : > { %3788 = vst.msk [vmem:[%s6613_s19 + $0x68] sm:$0xff] %vm3774_vm2, %v3755_v37  ;;  %v3754_v16 = vmin.f32 %v3722_v59, 6.0  ;;  %v3692_v41 = vadd.f32 %v6593_v11, %v3654_v45  ;;  %v3657_v17 = vadd.f32 %v5148_v10, %v3267_v35  ;;  %v3266_v22 = vadd.f32 %v3171_v42, %v2876_v30  ;;  %v5151_v36 = vpop.f32.mrf.mxu0  ;;  %v7001_v35 = vld [vmem:[#allocation2_spill] sm:$0xff] }
 0x1d9   : > { %v3725_v58 = vmax.f32 %v3693_v47, 0.0  ;;  %v5101_v29 = vpop.f32.mrf.mxu1  ;;  %v2882_v23 = vadd.f32 %v7001_v35, %v2491_v48  ;;  %v7017_v35 = vld [vmem:[#allocation38_spill] sm:$0xff] }
 0x1da   : > { %3787 = vst.msk [vmem:[%s6613_s19 + $0x60] sm:$0xff] %vm3774_vm2, %v3754_v16  ;;  %v3724_v39 = vmax.f32 %v3692_v41, 0.0  ;;  %v3695_v28 = vadd.f32 %v6593_v11, %v3657_v17  ;;  %v3656_v0 = vadd.f32 %v3561_v19, %v3266_v22  ;;  %v3269_v26 = vadd.f32 %v5101_v29, %v2879_v60  ;;  %v3571_v54 = vpop.f32.mrf.mxu0  ;;  %v7002_v60 = vld [vmem:[#allocation19_spill] sm:$0xff]  ;;  %v7006_v22 = vld [vmem:[#allocation21_spill] sm:$0xff] }
 0x1db   : > { %v3757_v12 = vmin.f32 %v3725_v58, 6.0  ;;  %v3181_v9 = vpop.f32.mrf.mxu1  ;;  %v2494_v3 = vadd.f32 %v7003_v31, %v7002_v60  ;;  %v2496_v4 = vadd.f32 %v7007_v24, %v7006_v22  ;;  %v7018_v60 = vld [vmem:[#allocation25_spill] sm:$0xff] }
 0x1dc   : > { %v3756_v33 = vmin.f32 %v3724_v39, 6.0  ;;  %v3727_v27 = vmax.f32 %v3695_v28, 0.0  ;;  %v3694_v55 = vadd.f32 %v6593_v11, %v3656_v0  ;;  %v3659_v14 = vadd.f32 %v5151_v36, %v3269_v26  ;;  %v5154_v34 = vpop.f32.mrf.mxu0  ;;  %v7008_v26 = vld [vmem:[#allocation8_spill] sm:$0xff] }
 0x1dd   : > { %3790 = vst.msk [vmem:[%s6613_s19 + $0x78] sm:$0xff] %vm3774_vm2, %v3757_v12  ;;  %v3268_v43 = vadd.f32 %v3181_v9, %v2878_v1  ;;  %v5104_v20 = vpop.f32.mrf.mxu1  ;;  %v2885_v32 = vadd.f32 %v7008_v26, %v2494_v3  ;;  %v7009_v1 = vld [vmem:[#allocation11_spill] sm:$0xff]  ;;  %v2500_v31 = vadd.f32 %v6575_v56, %v7018_v60 }
 0x1de   : > { %3789 = vst.msk [vmem:[%s6613_s19 + $0x70] sm:$0xff] %vm3774_vm2, %v3756_v33  ;;  %v3759_v51 = vmin.f32 %v3727_v27, 6.0  ;;  %v3726_v44 = vmax.f32 %v3694_v55, 0.0  ;;  %v3697_v57 = vadd.f32 %v6593_v11, %v3659_v14  ;;  %v3271_v25 = vadd.f32 %v5104_v20, %v2881_v2  ;;  %v3581_v21 = vpop.f32.mrf.mxu0  ;;  %v7010_v2 = vld [vmem:[#allocation22_spill] sm:$0xff] }
 0x1df   : > { %v3658_v30 = vadd.f32 %v3571_v54, %v3268_v43  ;;  %v3191_v61 = vpop.f32.mrf.mxu1  ;;  %v2884_v38 = vadd.f32 %v7009_v1, %v2493_v46  ;;  %v2495_v8 = vadd.f32 %v7011_v5, %v7010_v2  ;;  %v7012_v14 = vld [vmem:[#allocation34_spill] sm:$0xff] }
 0x1e0   : > { %3792 = vst.msk [vmem:[%s6613_s19 + $0x88] sm:$0xff] %vm3774_vm2, %v3759_v51  ;;  %v3758_v10 = vmin.f32 %v3726_v44, 6.0  ;;  %v3729_v37 = vmax.f32 %v3697_v57, 0.0  ;;  %v3661_v59 = vadd.f32 %v5154_v34, %v3271_v25  ;;  %v3270_v45 = vadd.f32 %v3191_v61, %v2880_v13  ;;  %v5157_v42 = vpop.f32.mrf.mxu0  ;;  %v7013_v13 = vld [vmem:[#allocation23_spill] sm:$0xff]  ;;  %v7014_v57 = vld [vmem:[#allocation36_spill] sm:$0xff] }
 0x1e1   : > { %v3696_v40 = vadd.f32 %v6593_v11, %v3658_v30  ;;  %v5107_v47 = vpop.f32.mrf.mxu1  ;;  %v2887_v50 = vadd.f32 %v7012_v14, %v2496_v4  ;;  %v2498_v49 = vadd.f32 %v6566_v52, %v7013_v13  ;;  %v2886_v25 = vadd.f32 %v7014_v57, %v2495_v8  ;;  %v7023_v8 = vld [vmem:[#allocation42_spill] sm:$0xff] }
 0x1e2   : > { %3791 = vst.msk [vmem:[%s6613_s19 + $0x80] sm:$0xff] %vm3774_vm2, %v3758_v10  ;;  %v3761_v19 = vmin.f32 %v3729_v37, 6.0  ;;  %v3699_v16 = vadd.f32 %v6593_v11, %v3661_v59  ;;  %v3660_v41 = vadd.f32 %v3581_v21, %v3270_v45  ;;  %v3273_v17 = vadd.f32 %v5107_v47, %v2883_v7  ;;  %v3591_v29 = vpop.f32.mrf.mxu0  ;;  %v7015_v37 = vld [vmem:[#allocation37_spill] sm:$0xff]  ;;  %v7016_v45 = vld [vmem:[#allocation24_spill] sm:$0xff] }
 0x1e3   : > { %v3728_v6 = vmax.f32 %v3696_v40, 0.0  ;;  %v3201_v58 = vpop.f32.mrf.mxu1  ;;  %v2889_v59 = vadd.f32 %v7015_v37, %v2498_v49 }
 0x1e4   : > { %3794 = vst.msk [vmem:[%s6613_s19 + $0x98] sm:$0xff] %vm3774_vm2, %v3761_v19  ;;  %v3731_v36 = vmax.f32 %v3699_v16, 0.0  ;;  %v3698_v39 = vadd.f32 %v6593_v11, %v3660_v41  ;;  %v3663_v28 = vadd.f32 %v5157_v42, %v3273_v17  ;;  %v3272_v0 = vadd.f32 %v3201_v58, %v2882_v23  ;;  %v5160_v9 = vpop.f32.mrf.mxu0  ;;  %v7019_v19 = vld [vmem:[#allocation26_spill] sm:$0xff]  ;;  %v7020_v16 = vld [vmem:[#allocation41_spill] sm:$0xff] }
 0x1e5   : > { %v3760_v18 = vmin.f32 %v3728_v6, 6.0  ;;  %v5110_v12 = vpop.f32.mrf.mxu1  ;;  %v2497_v23 = vadd.f32 %v7017_v35, %v7016_v45  ;;  %v2499_v41 = vadd.f32 %v7020_v16, %v7019_v19 }
 0x1e6   : > { %v3763_v54 = vmin.f32 %v3731_v36, 6.0  ;;  %v3730_v33 = vmax.f32 %v3698_v39, 0.0  ;;  %v3701_v27 = vadd.f32 %v6593_v11, %v3663_v28  ;;  %v3662_v55 = vadd.f32 %v3591_v29, %v3272_v0  ;;  %v3601_v43 = vpop.f32.mrf.mxu0  ;;  %v7021_v29 = vld [vmem:[#allocation39_spill] sm:$0xff]  ;;  %v7022_v39 = vld [vmem:[#allocation40_spill] sm:$0xff] }
 0x1e7   : > { %3793 = vst.msk [vmem:[%s6613_s19 + $0x90] sm:$0xff] %vm3774_vm2, %v3760_v18  ;;  %v3275_v63 = vadd.f32 %v5110_v12, %v2885_v32  ;;  %v3211_v48 = vpop.f32.mrf.mxu1  ;;  %v2888_v36 = vadd.f32 %v7021_v29, %v2497_v23  ;;  %v2891_v28 = vadd.f32 %v7022_v39, %v2500_v31  ;;  %v2890_v18 = vadd.f32 %v7023_v8, %v2499_v41 }
 0x1e8   : > { %3796 = vst.msk [vmem:[%s6613_s19 + $0xa8] sm:$0xff] %vm3774_vm2, %v3763_v54  ;;  %v3762_v20 = vmin.f32 %v3730_v33, 6.0  ;;  %v3733_v34 = vmax.f32 %v3701_v27, 0.0  ;;  %v3700_v51 = vadd.f32 %v6593_v11, %v3662_v55  ;;  %v3274_v44 = vadd.f32 %v3211_v48, %v2884_v38  ;;  %v5163_v30 = vpop.f32.mrf.mxu0 }
 0x1e9   : > { %v3665_v15 = vadd.f32 %v5160_v9, %v3275_v63  ;;  %v5113_v7 = vpop.f32.mrf.mxu1 }
 0x1ea   : > { %3795 = vst.msk [vmem:[%s6613_s19 + $0xa0] sm:$0xff] %vm3774_vm2, %v3762_v20  ;;  %v3765_v52 = vmin.f32 %v3733_v34, 6.0  ;;  %v3732_v61 = vmax.f32 %v3700_v51, 0.0  ;;  %v3664_v21 = vadd.f32 %v3601_v43, %v3274_v44  ;;  %v3277_v10 = vadd.f32 %v5113_v7, %v2887_v50  ;;  %v3611_v53 = vpop.f32.mrf.mxu0 }
 0x1eb   : > { %v3703_v3 = vadd.f32 %v6593_v11, %v3665_v15  ;;  %v3221_v62 = vpop.f32.mrf.mxu1 }
 0x1ec   : > { %3798 = vst.msk [vmem:[%s6613_s19 + $0xb8] sm:$0xff] %vm3774_vm2, %v3765_v52  ;;  %v3764_v46 = vmin.f32 %v3732_v61, 6.0  ;;  %v3702_v40 = vadd.f32 %v6593_v11, %v3664_v21  ;;  %v3667_v47 = vadd.f32 %v5163_v30, %v3277_v10  ;;  %v3276_v42 = vadd.f32 %v3221_v62, %v2886_v25  ;;  %v5166_v24 = vpop.f32.mrf.mxu0 }
 0x1ed   : > { %v3735_v17 = vmax.f32 %v3703_v3, 0.0  ;;  %v5116_v22 = vpop.f32.mrf.mxu1 }
 0x1ee   : > { %3797 = vst.msk [vmem:[%s6613_s19 + $0xb0] sm:$0xff] %vm3774_vm2, %v3764_v46  ;;  %v3734_v56 = vmax.f32 %v3702_v40, 0.0  ;;  %v3705_v4 = vadd.f32 %v6593_v11, %v3667_v47  ;;  %v3666_v6 = vadd.f32 %v3611_v53, %v3276_v42  ;;  %v3279_v58 = vadd.f32 %v5116_v22, %v2889_v59  ;;  %v3621_v32 = vpop.f32.mrf.mxu0 }
 0x1ef   : > { %v3767_v0 = vmin.f32 %v3735_v17, 6.0  ;;  %v3231_v26 = vpop.f32.mrf.mxu1 }
 0x1f0   : > { %v3766_v1 = vmin.f32 %v3734_v56, 6.0  ;;  %v3737_v38 = vmax.f32 %v3705_v4, 0.0  ;;  %v3704_v2 = vadd.f32 %v6593_v11, %v3666_v6  ;;  %v3669_v5 = vadd.f32 %v5166_v24, %v3279_v58  ;;  %v5169_v54 = vpop.f32.mrf.mxu0 }
 0x1f1   : > { %3800 = vst.msk [vmem:[%s6613_s19 + $0xc8] sm:$0xff] %vm3774_vm2, %v3767_v0  ;;  %v3278_v12 = vadd.f32 %v3231_v26, %v2888_v36  ;;  %v5119_v9 = vpop.f32.mrf.mxu1 }
 0x1f2   : > { %3799 = vst.msk [vmem:[%s6613_s19 + $0xc0] sm:$0xff] %vm3774_vm2, %v3766_v1  ;;  %v3769_v33 = vmin.f32 %v3737_v38, 6.0  ;;  %v3736_v27 = vmax.f32 %v3704_v2, 0.0  ;;  %v3707_v55 = vadd.f32 %v6593_v11, %v3669_v5  ;;  %v3281_v14 = vadd.f32 %v5119_v9, %v2891_v28  ;;  %v3631_v34 = vpop.f32.mrf.mxu0 }
 0x1f3   : > { %v3668_v50 = vadd.f32 %v3621_v32, %v3278_v12  ;;  %v3241_v13 = vpop.f32.mrf.mxu1 }
 0x1f4   : > { %3802 = vst.msk [vmem:[%s6613_s19 + $0xd8] sm:$0xff] %vm3774_vm2, %v3769_v33  ;;  %v3768_v49 = vmin.f32 %v3736_v27, 6.0  ;;  %v3739_v63 = vmax.f32 %v3707_v55, 0.0  ;;  %v3671_v48 = vadd.f32 %v5169_v54, %v3281_v14  ;;  %v3280_v43 = vadd.f32 %v3241_v13, %v2890_v18 }
 0x1f5   : > { %v3706_v20 = vadd.f32 %v6593_v11, %v3668_v50 }
 0x1f6   : > { %3801 = vst.msk [vmem:[%s6613_s19 + $0xd0] sm:$0xff] %vm3774_vm2, %v3768_v49  ;;  %v3771_v51 = vmin.f32 %v3739_v63, 6.0  ;;  %v3709_v44 = vadd.f32 %v6593_v11, %v3671_v48  ;;  %v3670_v57 = vadd.f32 %v3631_v34, %v3280_v43 }
 0x1f7   : > { %v3738_v25 = vmax.f32 %v3706_v20, 0.0 }
 0x1f8   : > { %3804 = vst.msk [vmem:[%s6613_s19 + $0xe8] sm:$0xff] %vm3774_vm2, %v3771_v51  ;;  %v3741_v15 = vmax.f32 %v3709_v44, 0.0  ;;  %v3708_v7 = vadd.f32 %v6593_v11, %v3670_v57 }
 0x1f9   : > { %v3770_v30 = vmin.f32 %v3738_v25, 6.0 }
 0x1fa   : > { %v3773_v52 = vmin.f32 %v3741_v15, 6.0  ;;  %v3740_v61 = vmax.f32 %v3708_v7, 0.0 }
 0x1fb   : > { %3803 = vst.msk [vmem:[%s6613_s19 + $0xe0] sm:$0xff] %vm3774_vm2, %v3770_v30 }
 0x1fc   : > { %3806 = vst.msk [vmem:[%s6613_s19 + $0xf8] sm:$0xff] %vm3774_vm2, %v3773_v52  ;;  %v3772_v21 = vmin.f32 %v3740_v61, 6.0 }
 0x1fe   : > { %3805 = vst.msk [vmem:[%s6613_s19 + $0xf0] sm:$0xff] %vm3774_vm2, %v3772_v21 }
 0x1ff PF: > { %s13_s14 = sadd.s32 1, %s5219_s14   ;;  %s7024_s12 = smov %s5215_s13 }
 0x200   : > { %p10_p5 = scmp.ge.s32.totalorder %s13_s14, 4   ;;  %s7025_s13 = smov %s7027_s15 }
 0x202   :  { %12 = sbr.rel (!%p10_p5) target bundleno = 2 (0x2), region = 78 }

</bundles_post_ra>
